<compile_context>
chip_gen: v7x
topology: tpu7x:2x2x1
jax: 0.10.0
libtpu: 0.0.40
codegen_flags: <defaults>
</compile_context>

<pallas_src>
import functools
import math

import jax
import jax.numpy as jnp
from jax.experimental import pallas as pl
from jax.experimental.pallas import tpu as pltpu


_SQRT2_INV = 1.0 / math.sqrt(2.0)

# Tile caps.  Double-buffered operand tiles + accumulator stay inside the
# per-generation VMEM budget returned by _vmem_limit_bytes().
_TM, _TN, _TK = 512, 512, 512


@functools.lru_cache(maxsize=None)
def _vmem_limit_bytes():
    """Half of physical VMEM, capped at 64 MiB (=> 64 MiB on v5e/v6e, 32 MiB on v7x)."""
    try:
        cap = pltpu.get_tpu_info().vmem_capacity_bytes
    except Exception:
        return 32 * 1024 * 1024
    return int(max(32 * 1024 * 1024, min(cap // 2, 64 * 1024 * 1024)))


def _pick_tile(d, cap, align):
    """Largest tile <= cap dividing d that is a multiple of `align`.
    Full-extent blocks are always legal, so fall back to d itself."""
    if d <= cap:
        return d
    t = cap
    while t >= align and d % t:
        t //= 2
    return t if (t >= align and d % t == 0) else d


def _maybe_split(d, t, align):
    """If one tile covers the whole dim, try to split into >=2 aligned tiles so
    both v7x TensorCores get a grid step."""
    if t != d:
        return t
    cand = (d // 2) // align * align
    while cand >= align:
        if d % cand == 0:
            return cand
        cand -= align
    return t


# ------------------------------ Pallas kernels ------------------------------

def _fused_linear_kernel(*refs, nk, activation, fuse_ln, fuse_res):
    """Tiled matmul (bf16 operands, f32 accumulation): optional fused LayerNorm
    prologue (cached per row block), bias / exact-GELU / residual epilogue."""
    it = iter(refs)
    x_ref = next(it)
    w_ref = next(it)
    b_ref = next(it)
    g_ref = next(it) if fuse_ln else None
    bb_ref = next(it) if fuse_ln else None
    r_ref = next(it) if fuse_res else None
    o_ref = next(it)
    acc_ref = next(it) if nk > 1 else None
    ln_ref = next(it) if fuse_ln else None

    j = pl.program_id(1)
    k = pl.program_id(2)

    if fuse_ln:
        # LN of the x tile depends only on the row block (i): compute it once at
        # j == 0, cache in bf16 VMEM scratch, reuse for every output-column block.
        # (The j axis is marked "arbitrary" so it is never split across cores.)
        @pl.when(j == 0)
        def _():
            xf = x_ref[...]                                       # (tm, K) f32
            mu = jnp.mean(xf, axis=-1, keepdims=True)
            var = jnp.mean((xf - mu) ** 2, axis=-1, keepdims=True)
            xn = (xf - mu) * jax.lax.rsqrt(var + 1e-5) * g_ref[...] + bb_ref[...]
            ln_ref[...] = xn.astype(ln_ref.dtype)
        x = ln_ref[...]                                           # bf16
    else:
        x = x_ref[...].astype(jnp.bfloat16)
    w = w_ref[...].astype(jnp.bfloat16)

    def finish(y):
        y = y + b_ref[...]
        if activation == "gelu":
            # Exact GELU (erf), matching torch.nn.GELU() default.
            y = 0.5 * y * (1.0 + jax.lax.erf(y * _SQRT2_INV))
        if fuse_res:
            y = y + r_ref[...]
        o_ref[...] = y.astype(o_ref.dtype)

    if nk == 1:
        # Single k step: no accumulator round-trip through VMEM scratch.
        finish(jnp.dot(x, w, preferred_element_type=jnp.float32))
    else:
        @pl.when(k == 0)
        def _():
            acc_ref[...] = jnp.zeros_like(acc_ref)
        acc_ref[...] += jnp.dot(x, w, preferred_element_type=jnp.float32)

        @pl.when(k == nk - 1)
        def _():
            finish(acc_ref[...])


def _attn_kernel(qkv_ref, o_ref, *, heads, dh, s_valid, scale):
    """All heads of one batch element per grid step.  The full (Sp, 3*dim) qkv
    block arrives in one piece (no XLA slicing); heads are sliced in-kernel and
    each head's output is stored directly into its lane slice of o_ref (nothing
    stays live across heads, no concatenate)."""
    dim = heads * dh
    qkv = qkv_ref[0].astype(jnp.bfloat16)                 # (Sp, 3*dim), one cast
    sp = qkv.shape[0]
    key_valid = jax.lax.broadcasted_iota(jnp.int32, (sp, sp), 1) < s_valid

    for h in range(heads):                                # static unroll
        lo = h * dh
        qh = qkv[:, lo:lo + dh]
        kh = qkv[:, dim + lo:dim + lo + dh]
        vh = qkv[:, 2 * dim + lo:2 * dim + lo + dh]
        # Contract last axes directly -> no explicit K transpose; bf16 on the MXU.
        s = jax.lax.dot_general(qh, kh, (((1,), (1,)), ((), ())),
                                preferred_element_type=jnp.float32) * scale
        s = jnp.where(key_valid, s, -1e30)                # mask padded key columns
        s = s - jnp.max(s, axis=-1, keepdims=True)
        p = jnp.exp(s)
        inv_l = pl.reciprocal(jnp.sum(p, axis=-1, keepdims=True), approx=True)
        oh = jnp.dot(p.astype(jnp.bfloat16), vh,
                     preferred_element_type=jnp.float32) * inv_l
        o_ref[0, :, lo:lo + dh] = oh.astype(o_ref.dtype)


def _assemble_tokens_kernel(tok_ref, cls_ref, pos_ref, o_ref, *, s_valid, seq_pad):
    """cls-token concat + positional-embedding add + zero padding of the sequence.
    Every output region is written exactly once; only the padded tail is zeroed."""
    o_ref[0, 0:1, :] = cls_ref[0] + pos_ref[0, 0:1, :]
    o_ref[0, 1:s_valid, :] = tok_ref[0] + pos_ref[0, 1:s_valid, :]
    if seq_pad > s_valid:
        o_ref[0, s_valid:seq_pad, :] = jnp.zeros(
            (seq_pad - s_valid, o_ref.shape[-1]), o_ref.dtype)


# ------------------------------ kernel wrappers ------------------------------

def fused_linear(x, w, b, *, ln_g=None, ln_b=None, residual=None, activation=None):
    """y = [LN](x) @ w + b, optionally fused GELU and/or residual add.
    x:(M,K) f32, w:(K,N) bf16/f32, b:(N,) f32, residual:(M,N) f32."""
    M, K = x.shape
    N = w.shape[1]
    fuse_ln = ln_g is not None
    fuse_res = residual is not None

    tm = _pick_tile(M, _TM, 8)
    tn = _pick_tile(N, _TN, 128)
    tk = K if fuse_ln else _pick_tile(K, _TK, 128)   # LN needs full K per tile
    # Expose >= 2 grid steps on a parallel axis when the matmul fits one tile.
    if (M // tm) * (N // tn) < 2:
        tm = _maybe_split(M, tm, 8)
    if (M // tm) * (N // tn) < 2:
        tn = _maybe_split(N, tn, 128)
    nm, nn, nk = M // tm, N // tn, K // tk

    in_specs = [
        pl.BlockSpec((tm, tk), lambda i, j, k: (i, k)),
        pl.BlockSpec((tk, tn), lambda i, j, k: (k, j)),
        pl.BlockSpec((1, tn), lambda i, j, k: (0, j)),
    ]
    args = [x, w, b.reshape(1, N)]
    if fuse_ln:
        in_specs += [pl.BlockSpec((1, tk), lambda i, j, k: (0, k)),
                     pl.BlockSpec((1, tk), lambda i, j, k: (0, k))]
        args += [ln_g.reshape(1, K), ln_b.reshape(1, K)]
    if fuse_res:
        in_specs.append(pl.BlockSpec((tm, tn), lambda i, j, k: (i, j)))
        args.append(residual)

    scratch = []
    if nk > 1:
        scratch.append(pltpu.VMEM((tm, tn), jnp.float32))
    if fuse_ln:
        scratch.append(pltpu.VMEM((tm, tk), jnp.bfloat16))
        dims = ("parallel", "arbitrary", "arbitrary")   # j reuses the LN cache
    else:
        dims = ("parallel", "parallel", "arbitrary")

    kern = functools.partial(_fused_linear_kernel, nk=nk, activation=activation,
                             fuse_ln=fuse_ln, fuse_res=fuse_res)
    return pl.pallas_call(
        kern,
        grid=(nm, nn, nk),
        out_shape=jax.ShapeDtypeStruct((M, N), jnp.float32),
        in_specs=in_specs,
        out_specs=pl.BlockSpec((tm, tn), lambda i, j, k: (i, j)),
        scratch_shapes=scratch,
        compiler_params=pltpu.CompilerParams(
            dimension_semantics=dims,
            vmem_limit_bytes=_vmem_limit_bytes()),
    )(*args)


def multihead_attention(qkv, *, heads, s_valid, scale):
    """qkv: (B, Sp, 3*dim) -> (B, Sp, dim); grid over batch (B >= 2 keeps both
    v7x TensorCores busy)."""
    B, Sp, three_dim = qkv.shape
    dim = three_dim // 3
    dh = dim // heads
    kern = functools.partial(_attn_kernel, heads=heads, dh=dh,
                             s_valid=s_valid, scale=scale)
    return pl.pallas_call(
        kern,
        grid=(B,),
        out_shape=jax.ShapeDtypeStruct((B, Sp, dim), jnp.float32),
        in_specs=[pl.BlockSpec((1, Sp, three_dim), lambda b: (b, 0, 0))],
        out_specs=pl.BlockSpec((1, Sp, dim), lambda b: (b, 0, 0)),
        compiler_params=pltpu.CompilerParams(
            dimension_semantics=("parallel",),
            vmem_limit_bytes=_vmem_limit_bytes()),
    )(qkv)


def assemble_tokens(patch_tok, cls, pos, seq_pad):
    """(B, Np, D) patches + cls + pos -> zero-padded (B, seq_pad, D)."""
    B, Np, dim = patch_tok.shape
    S = Np + 1
    kern = functools.partial(_assemble_tokens_kernel, s_valid=S, seq_pad=seq_pad)
    return pl.pallas_call(
        kern,
        grid=(B,),
        out_shape=jax.ShapeDtypeStruct((B, seq_pad, dim), jnp.float32),
        in_specs=[
            pl.BlockSpec((1, Np, dim), lambda b: (b, 0, 0)),
            pl.BlockSpec((1, 1, dim), lambda b: (0, 0, 0)),
            pl.BlockSpec((1, S, dim), lambda b: (0, 0, 0)),
        ],
        out_specs=pl.BlockSpec((1, seq_pad, dim), lambda b: (b, 0, 0)),
        compiler_params=pltpu.CompilerParams(
            dimension_semantics=("parallel",)),
    )(patch_tok, cls, pos)


# --------------------------------- parameters --------------------------------

def init_vit_params(key, image_size, patch_size, num_classes, dim, depth,
                    heads, mlp_dim):
    num_patches = (image_size // patch_size) ** 2
    patch_dim = 3 * patch_size * patch_size
    keys = iter(jax.random.split(key, 8 + 12 * depth))

    def nrm(shape, scale=0.02):
        return scale * jax.random.normal(next(keys), shape, dtype=jnp.float32)

    params = {
        "patch_w": nrm((patch_dim, dim)),
        "patch_b": nrm((dim,)),
        "cls": nrm((1, 1, dim), 1.0),                    # ~ torch.randn
        "pos": nrm((1, num_patches + 1, dim), 1.0),      # ~ torch.randn
        "head_ln_g": jnp.ones((dim,), jnp.float32),
        "head_ln_b": jnp.zeros((dim,), jnp.float32),
        "head_w": nrm((dim, num_classes)),
        "head_b": nrm((num_classes,)),
        "layers": [],
    }
    for _ in range(depth):
        params["layers"].append({
            "ln1_g": jnp.ones((dim,), jnp.float32),
            "ln1_b": jnp.zeros((dim,), jnp.float32),
            "qkv_w": nrm((dim, 3 * dim)),    # == in_proj_weight.T
            "qkv_b": nrm((3 * dim,)),
            "out_w": nrm((dim, dim)),        # == out_proj.weight.T
            "out_b": nrm((dim,)),
            "ln2_g": jnp.ones((dim,), jnp.float32),
            "ln2_b": jnp.zeros((dim,), jnp.float32),
            "mlp_w1": nrm((dim, mlp_dim)),
            "mlp_b1": nrm((mlp_dim,)),
            "mlp_w2": nrm((mlp_dim, dim)),
            "mlp_b2": nrm((dim,)),
        })
    return params


def prepare_params(params):
    """One-time parameter prep (hoisted out of the jitted forward):
    matmul weights -> bf16 (MXU-native on v5e/v6e/v7x) and the classification
    head padded to a 128-lane multiple for dense stores."""
    nc = params["head_w"].shape[1]
    n_pad = ((nc + 127) // 128) * 128
    out = dict(params)
    out["patch_w"] = params["patch_w"].astype(jnp.bfloat16)
    out["head_w"] = jnp.pad(params["head_w"],
                            ((0, 0), (0, n_pad - nc))).astype(jnp.bfloat16)
    out["head_b"] = jnp.pad(params["head_b"], (0, n_pad - nc))
    out["layers"] = []
    for lyr in params["layers"]:
        l = dict(lyr)
        for k in ("qkv_w", "out_w", "mlp_w1", "mlp_w2"):
            l[k] = lyr[k].astype(jnp.bfloat16)
        out["layers"].append(l)
    return out


# --------------------------------- forward -----------------------------------

def vit_forward(x, params, *, patch_size, heads, num_classes):
    B, C, H, W = x.shape
    p = patch_size
    dim = params["patch_w"].shape[1]
    dh = dim // heads

    # PatchSplitter (pure reshape/transpose glue, same permutation as PyTorch).
    xp = x.reshape(B, C, H // p, p, W // p, p)
    xp = xp.transpose(0, 2, 4, 1, 3, 5).reshape(B, -1, C * p * p)
    Np = xp.shape[1]

    # Patch embedding (tiled Pallas matmul, bf16 MXU).
    tok = fused_linear(xp.reshape(B * Np, C * p * p),
                       params["patch_w"], params["patch_b"]).reshape(B, Np, dim)

    # cls token + positional embedding, padded to a multiple of 8 rows.
    S = Np + 1
    Sp = ((S + 7) // 8) * 8
    x2 = assemble_tokens(tok, params["cls"], params["pos"], Sp)   # (B, Sp, dim)
    x2 = x2.reshape(B * Sp, dim)

    scale = 1.0 / math.sqrt(dh)
    for lyr in params["layers"]:
        # --- self-attention block: LN1 fused into the QKV matmul, residual
        #     fused into the output projection; whole qkv passed to attention. ---
        qkv = fused_linear(x2, lyr["qkv_w"], lyr["qkv_b"],
                           ln_g=lyr["ln1_g"], ln_b=lyr["ln1_b"])
        ao = multihead_attention(qkv.reshape(B, Sp, 3 * dim),
                                 heads=heads, s_valid=S, scale=scale)
        x2 = fused_linear(ao.reshape(B * Sp, dim), lyr["out_w"], lyr["out_b"],
                          residual=x2)

        # --- MLP block (dropout p=0 -> identity): LN2 + exact GELU fused into
        #     W1, residual fused into W2. ---
        h = fused_linear(x2, lyr["mlp_w1"], lyr["mlp_b1"],
                         ln_g=lyr["ln2_g"], ln_b=lyr["ln2_b"],
                         activation="gelu")
        x2 = fused_linear(h, lyr["mlp_w2"], lyr["mlp_b2"], residual=x2)

    # Classification head on the cls token: LN fused; weights were padded to
    # 128 lanes at prepare_params() time, slice back to num_classes here.
    cls_out = x2.reshape(B, Sp, dim)[:, 0]                  # (B, dim)
    logits = fused_linear(cls_out, params["head_w"], params["head_b"],
                          ln_g=params["head_ln_g"], ln_b=params["head_ln_b"])
    return logits[:, :num_classes]


# ----------------------------------- main -------------------------------------

if __name__ == "__main__":
    # Lane-friendly small config: dim is a full 128-lane vreg width.
    image_size, patch_size = 16, 4
    num_classes, dim, depth, heads, mlp_dim = 10, 128, 2, 4, 256

    key = jax.random.PRNGKey(0)
    kx, kp = jax.random.split(key)
    x = jax.random.normal(kx, (2, 3, image_size, image_size), dtype=jnp.float32)
    params = prepare_params(
        init_vit_params(kp, image_size, patch_size, num_classes,
                        dim, depth, heads, mlp_dim))

    fwd = jax.jit(functools.partial(vit_forward, patch_size=patch_size,
                                    heads=heads, num_classes=num_classes))
    out = fwd(x, params)
    jax.block_until_ready(out)
    assert out.shape == (2, num_classes), out.shape
    print("KERNEL_OK")
</pallas_src>

<mosaic_0001>
module attributes {stable_mosaic.version = 11 : i64} {
  func.func @_fused_linear_kernel(%arg0: i32, %arg1: i32, %arg2: i32, %arg3: memref<16x48xf32, #tpu.memory_space<vmem>>, %arg4: memref<48x128xbf16, #tpu.memory_space<vmem>>, %arg5: memref<1x128xf32, #tpu.memory_space<vmem>>, %arg6: memref<16x128xf32, #tpu.memory_space<vmem>>) attributes {dimension_semantics = [#tpu.dimension_semantics<parallel>, #tpu.dimension_semantics<parallel>, #tpu.dimension_semantics<arbitrary>], iteration_bounds = array<i64: 2, 1, 1>, scalar_prefetch = 0 : i64, scratch_operands = 0 : i64, tpu.core_type = #tpu.core_type<tc>, window_params = [{transform_indices = @transform_0, window_bounds = array<i64: 16, 48>}, {transform_indices = @transform_1, window_bounds = array<i64: 48, 128>}, {transform_indices = @transform_2, window_bounds = array<i64: 1, 128>}, {transform_indices = @transform_3, window_bounds = array<i64: 16, 128>}]} {
    %c0 = arith.constant 0 : index
    %c0_0 = arith.constant 0 : index
    %0 = vector.load %arg3[%c0, %c0_0] : memref<16x48xf32, #tpu.memory_space<vmem>>, vector<16x48xf32>
    %1 = arith.truncf %0 : vector<16x48xf32> to vector<16x48xbf16>
    %c0_1 = arith.constant 0 : index
    %c0_2 = arith.constant 0 : index
    %2 = vector.load %arg4[%c0_1, %c0_2] : memref<48x128xbf16, #tpu.memory_space<vmem>>, vector<48x128xbf16>
    %cst = arith.constant dense<0.000000e+00> : vector<16x128xf32>
    %3 = tpu.matmul %1, %2, %cst {dimension_numbers = #tpu.dot_dimension_numbers<[1], [0], [0], [1], [0, 0, 1, 1], [], []>} : vector<16x48xbf16>, vector<48x128xbf16>, vector<16x128xf32> -> vector<16x128xf32>
    %c0_3 = arith.constant 0 : index
    %c0_4 = arith.constant 0 : index
    %4 = vector.load %arg5[%c0_3, %c0_4] : memref<1x128xf32, #tpu.memory_space<vmem>>, vector<1x128xf32>
    %5 = vector.broadcast %4 : vector<1x128xf32> to vector<16x128xf32>
    %6 = arith.addf %3, %5 : vector<16x128xf32>
    %c0_5 = arith.constant 0 : index
    %c0_6 = arith.constant 0 : index
    %7 = vector.load %arg6[%c0_5, %c0_6] : memref<16x128xf32, #tpu.memory_space<vmem>>, vector<16x128xf32>
    tpu.vector_store %arg6[%c0_5, %c0_6], %6 {strides = array<i32>} : memref<16x128xf32, #tpu.memory_space<vmem>>, vector<16x128xf32>,
    return
  }
  func.func @transform_0(%arg0: i32, %arg1: i32, %arg2: i32) -> (i32, i32) {
    %c0_i32 = arith.constant 0 : i32
    return %arg0, %arg2 : i32, i32
  }
  func.func @transform_1(%arg0: i32, %arg1: i32, %arg2: i32) -> (i32, i32) {
    %c0_i32 = arith.constant 0 : i32
    return %arg2, %arg1 : i32, i32
  }
  func.func @transform_2(%arg0: i32, %arg1: i32, %arg2: i32) -> (i32, i32) {
    %c0_i32 = arith.constant 0 : i32
    %c0_i32_0 = arith.constant 0 : i32
    return %c0_i32, %arg1 : i32, i32
  }
  func.func @transform_3(%arg0: i32, %arg1: i32, %arg2: i32) -> (i32, i32) {
    %c0_i32 = arith.constant 0 : i32
    return %arg0, %arg1 : i32, i32
  }
}

module attributes {stable_mosaic.version = 11 : i64} {
  func.func @_fused_linear_kernel(%arg0: i32, %arg1: i32, %arg2: i32, %arg3: memref<24x128xf32, #tpu.memory_space<vmem>>, %arg4: memref<128x384xbf16, #tpu.memory_space<vmem>>, %arg5: memref<1x384xf32, #tpu.memory_space<vmem>>, %arg6: memref<1x128xf32, #tpu.memory_space<vmem>>, %arg7: memref<1x128xf32, #tpu.memory_space<vmem>>, %arg8: memref<24x384xf32, #tpu.memory_space<vmem>>, %arg9: memref<24x128xbf16, #tpu.memory_space<vmem>>) attributes {dimension_semantics = [#tpu.dimension_semantics<parallel>, #tpu.dimension_semantics<arbitrary>, #tpu.dimension_semantics<arbitrary>], iteration_bounds = array<i64: 2, 1, 1>, scalar_prefetch = 0 : i64, scratch_operands = 1 : i64, tpu.core_type = #tpu.core_type<tc>, window_params = [{transform_indices = @transform_0, window_bounds = array<i64: 24, 128>}, {transform_indices = @transform_1, window_bounds = array<i64: 128, 384>}, {transform_indices = @transform_2, window_bounds = array<i64: 1, 384>}, {transform_indices = @transform_3, window_bounds = array<i64: 1, 128>}, {transform_indices = @transform_4, window_bounds = array<i64: 1, 128>}, {transform_indices = @transform_5, window_bounds = array<i64: 24, 384>}]} {
    %c0_i32 = arith.constant 0 : i32
    %0 = arith.cmpi eq, %arg1, %c0_i32 : i32
    %1 = arith.extui %0 : i1 to i32
    %c0_i32_0 = arith.constant 0 : i32
    %2 = arith.cmpi ne, %1, %c0_i32_0 : i32
    scf.if %2 {
      %c0_8 = arith.constant 0 : index
      %c0_9 = arith.constant 0 : index
      %10 = vector.load %arg3[%c0_8, %c0_9] : memref<24x128xf32, #tpu.memory_space<vmem>>, vector<24x128xf32>
      %cst_10 = arith.constant dense<0.000000e+00> : vector<24xf32>
      %11 = vector.multi_reduction <add>, %10, %cst_10 [1] : vector<24x128xf32> to vector<24xf32>
      %12 = vector.shape_cast %11 : vector<24xf32> to vector<24x1xf32>
      %cst_11 = arith.constant 1.280000e+02 : f32
      %13 = vector.broadcast %cst_11 : f32 to vector<24x1xf32>
      %14 = arith.divf %12, %13 : vector<24x1xf32>
      %15 = vector.broadcast %14 : vector<24x1xf32> to vector<24x128xf32>
      %16 = arith.subf %10, %15 : vector<24x128xf32>
      %17 = arith.mulf %16, %16 : vector<24x128xf32>
      %cst_12 = arith.constant dense<0.000000e+00> : vector<24xf32>
      %18 = vector.multi_reduction <add>, %17, %cst_12 [1] : vector<24x128xf32> to vector<24xf32>
      %19 = vector.shape_cast %18 : vector<24xf32> to vector<24x1xf32>
      %cst_13 = arith.constant 1.280000e+02 : f32
      %20 = vector.broadcast %cst_13 : f32 to vector<24x1xf32>
      %21 = arith.divf %19, %20 : vector<24x1xf32>
      %22 = vector.broadcast %14 : vector<24x1xf32> to vector<24x128xf32>
      %23 = arith.subf %10, %22 : vector<24x128xf32>
      %cst_14 = arith.constant 9.99999974E-6 : f32
      %24 = vector.broadcast %cst_14 : f32 to vector<24x1xf32>
      %25 = arith.addf %21, %24 : vector<24x1xf32>
      %26 = math.rsqrt %25 : vector<24x1xf32>
      %27 = vector.broadcast %26 : vector<24x1xf32> to vector<24x128xf32>
      %28 = arith.mulf %23, %27 : vector<24x128xf32>
      %c0_15 = arith.constant 0 : index
      %c0_16 = arith.constant 0 : index
      %29 = vector.load %arg6[%c0_15, %c0_16] : memref<1x128xf32, #tpu.memory_space<vmem>>, vector<1x128xf32>
      %30 = vector.broadcast %29 : vector<1x128xf32> to vector<24x128xf32>
      %31 = arith.mulf %28, %30 : vector<24x128xf32>
      %c0_17 = arith.constant 0 : index
      %c0_18 = arith.constant 0 : index
      %32 = vector.load %arg7[%c0_17, %c0_18] : memref<1x128xf32, #tpu.memory_space<vmem>>, vector<1x128xf32>
      %33 = vector.broadcast %32 : vector<1x128xf32> to vector<24x128xf32>
      %34 = arith.addf %31, %33 : vector<24x128xf32>
      %35 = arith.truncf %34 : vector<24x128xf32> to vector<24x128xbf16>
      %c0_19 = arith.constant 0 : index
      %c0_20 = arith.constant 0 : index
      %36 = vector.load %arg9[%c0_19, %c0_20] : memref<24x128xbf16, #tpu.memory_space<vmem>>, vector<24x128xbf16>
      tpu.vector_store %arg9[%c0_19, %c0_20], %35 {strides = array<i32>} : memref<24x128xbf16, #tpu.memory_space<vmem>>, vector<24x128xbf16>,
    } else {
    }
    %c0 = arith.constant 0 : index
    %c0_1 = arith.constant 0 : index
    %3 = vector.load %arg9[%c0, %c0_1] : memref<24x128xbf16, #tpu.memory_space<vmem>>, vector<24x128xbf16>
    %c0_2 = arith.constant 0 : index
    %c0_3 = arith.constant 0 : index
    %4 = vector.load %arg4[%c0_2, %c0_3] : memref<128x384xbf16, #tpu.memory_space<vmem>>, vector<128x384xbf16>
    %cst = arith.constant dense<0.000000e+00> : vector<24x384xf32>
    %5 = tpu.matmul %3, %4, %cst {dimension_numbers = #tpu.dot_dimension_numbers<[1], [0], [0], [1], [0, 0, 1, 1], [], []>} : vector<24x128xbf16>, vector<128x384xbf16>, vector<24x384xf32> -> vector<24x384xf32>
    %c0_4 = arith.constant 0 : index
    %c0_5 = arith.constant 0 : index
    %6 = vector.load %arg5[%c0_4, %c0_5] : memref<1x384xf32, #tpu.memory_space<vmem>>, vector<1x384xf32>
    %7 = vector.broadcast %6 : vector<1x384xf32> to vector<24x384xf32>
    %8 = arith.addf %5, %7 : vector<24x384xf32>
    %c0_6 = arith.constant 0 : index
    %c0_7 = arith.constant 0 : index
    %9 = vector.load %arg8[%c0_6, %c0_7] : memref<24x384xf32, #tpu.memory_space<vmem>>, vector<24x384xf32>
    tpu.vector_store %arg8[%c0_6, %c0_7], %8 {strides = array<i32>} : memref<24x384xf32, #tpu.memory_space<vmem>>, vector<24x384xf32>,
    return
  }
  func.func @transform_0(%arg0: i32, %arg1: i32, %arg2: i32) -> (i32, i32) {
    %c0_i32 = arith.constant 0 : i32
    return %arg0, %arg2 : i32, i32
  }
  func.func @transform_1(%arg0: i32, %arg1: i32, %arg2: i32) -> (i32, i32) {
    %c0_i32 = arith.constant 0 : i32
    return %arg2, %arg1 : i32, i32
  }
  func.func @transform_2(%arg0: i32, %arg1: i32, %arg2: i32) -> (i32, i32) {
    %c0_i32 = arith.constant 0 : i32
    %c0_i32_0 = arith.constant 0 : i32
    return %c0_i32, %arg1 : i32, i32
  }
  func.func @transform_3(%arg0: i32, %arg1: i32, %arg2: i32) -> (i32, i32) {
    %c0_i32 = arith.constant 0 : i32
    %c0_i32_0 = arith.constant 0 : i32
    return %c0_i32, %arg2 : i32, i32
  }
  func.func @transform_4(%arg0: i32, %arg1: i32, %arg2: i32) -> (i32, i32) {
    %c0_i32 = arith.constant 0 : i32
    %c0_i32_0 = arith.constant 0 : i32
    return %c0_i32, %arg2 : i32, i32
  }
  func.func @transform_5(%arg0: i32, %arg1: i32, %arg2: i32) -> (i32, i32) {
    %c0_i32 = arith.constant 0 : i32
    return %arg0, %arg1 : i32, i32
  }
}

module attributes {stable_mosaic.version = 11 : i64} {
  func.func @_fused_linear_kernel(%arg0: i32, %arg1: i32, %arg2: i32, %arg3: memref<24x128xf32, #tpu.memory_space<vmem>>, %arg4: memref<128x128xbf16, #tpu.memory_space<vmem>>, %arg5: memref<1x128xf32, #tpu.memory_space<vmem>>, %arg6: memref<24x128xf32, #tpu.memory_space<vmem>>, %arg7: memref<24x128xf32, #tpu.memory_space<vmem>>) attributes {dimension_semantics = [#tpu.dimension_semantics<parallel>, #tpu.dimension_semantics<parallel>, #tpu.dimension_semantics<arbitrary>], iteration_bounds = array<i64: 2, 1, 1>, scalar_prefetch = 0 : i64, scratch_operands = 0 : i64, tpu.core_type = #tpu.core_type<tc>, window_params = [{transform_indices = @transform_0, window_bounds = array<i64: 24, 128>}, {transform_indices = @transform_1, window_bounds = array<i64: 128, 128>}, {transform_indices = @transform_2, window_bounds = array<i64: 1, 128>}, {transform_indices = @transform_3, window_bounds = array<i64: 24, 128>}, {transform_indices = @transform_4, window_bounds = array<i64: 24, 128>}]} {
    %c0 = arith.constant 0 : index
    %c0_0 = arith.constant 0 : index
    %0 = vector.load %arg3[%c0, %c0_0] : memref<24x128xf32, #tpu.memory_space<vmem>>, vector<24x128xf32>
    %1 = arith.truncf %0 : vector<24x128xf32> to vector<24x128xbf16>
    %c0_1 = arith.constant 0 : index
    %c0_2 = arith.constant 0 : index
    %2 = vector.load %arg4[%c0_1, %c0_2] : memref<128x128xbf16, #tpu.memory_space<vmem>>, vector<128x128xbf16>
    %cst = arith.constant dense<0.000000e+00> : vector<24x128xf32>
    %3 = tpu.matmul %1, %2, %cst {dimension_numbers = #tpu.dot_dimension_numbers<[1], [0], [0], [1], [0, 0, 1, 1], [], []>} : vector<24x128xbf16>, vector<128x128xbf16>, vector<24x128xf32> -> vector<24x128xf32>
    %c0_3 = arith.constant 0 : index
    %c0_4 = arith.constant 0 : index
    %4 = vector.load %arg5[%c0_3, %c0_4] : memref<1x128xf32, #tpu.memory_space<vmem>>, vector<1x128xf32>
    %5 = vector.broadcast %4 : vector<1x128xf32> to vector<24x128xf32>
    %6 = arith.addf %3, %5 : vector<24x128xf32>
    %c0_5 = arith.constant 0 : index
    %c0_6 = arith.constant 0 : index
    %7 = vector.load %arg6[%c0_5, %c0_6] : memref<24x128xf32, #tpu.memory_space<vmem>>, vector<24x128xf32>
    %8 = arith.addf %6, %7 : vector<24x128xf32>
    %c0_7 = arith.constant 0 : index
    %c0_8 = arith.constant 0 : index
    %9 = vector.load %arg7[%c0_7, %c0_8] : memref<24x128xf32, #tpu.memory_space<vmem>>, vector<24x128xf32>
    tpu.vector_store %arg7[%c0_7, %c0_8], %8 {strides = array<i32>} : memref<24x128xf32, #tpu.memory_space<vmem>>, vector<24x128xf32>,
    return
  }
  func.func @transform_0(%arg0: i32, %arg1: i32, %arg2: i32) -> (i32, i32) {
    %c0_i32 = arith.constant 0 : i32
    return %arg0, %arg2 : i32, i32
  }
  func.func @transform_1(%arg0: i32, %arg1: i32, %arg2: i32) -> (i32, i32) {
    %c0_i32 = arith.constant 0 : i32
    return %arg2, %arg1 : i32, i32
  }
  func.func @transform_2(%arg0: i32, %arg1: i32, %arg2: i32) -> (i32, i32) {
    %c0_i32 = arith.constant 0 : i32
    %c0_i32_0 = arith.constant 0 : i32
    return %c0_i32, %arg1 : i32, i32
  }
  func.func @transform_3(%arg0: i32, %arg1: i32, %arg2: i32) -> (i32, i32) {
    %c0_i32 = arith.constant 0 : i32
    return %arg0, %arg1 : i32, i32
  }
  func.func @transform_4(%arg0: i32, %arg1: i32, %arg2: i32) -> (i32, i32) {
    %c0_i32 = arith.constant 0 : i32
    return %arg0, %arg1 : i32, i32
  }
}

module attributes {stable_mosaic.version = 11 : i64} {
  func.func @_assemble_tokens_kernel(%arg0: i32, %arg1: memref<1x16x128xf32, #tpu.memory_space<vmem>>, %arg2: memref<1x1x128xf32, #tpu.memory_space<vmem>>, %arg3: memref<1x17x128xf32, #tpu.memory_space<vmem>>, %arg4: memref<1x24x128xf32, #tpu.memory_space<vmem>>) attributes {dimension_semantics = [#tpu.dimension_semantics<parallel>], iteration_bounds = array<i64: 2>, scalar_prefetch = 0 : i64, scratch_operands = 0 : i64, tpu.core_type = #tpu.core_type<tc>, window_params = [{transform_indices = @transform_0, window_bounds = array<i64: 1, 16, 128>}, {pipeline_mode = #tpu.pipeline_mode<synchronous>, transform_indices = @transform_1, window_bounds = array<i64: 1, 1, 128>}, {pipeline_mode = #tpu.pipeline_mode<synchronous>, transform_indices = @transform_2, window_bounds = array<i64: 1, 17, 128>}, {transform_indices = @transform_3, window_bounds = array<i64: 1, 24, 128>}]} {
    %c0 = arith.constant 0 : index
    %c0_0 = arith.constant 0 : index
    %c0_1 = arith.constant 0 : index
    %0 = vector.load %arg2[%c0, %c0_0, %c0_1] : memref<1x1x128xf32, #tpu.memory_space<vmem>>, vector<1x1x128xf32>
    %1 = vector.shape_cast %0 : vector<1x1x128xf32> to vector<1x128xf32>
    %c0_2 = arith.constant 0 : index
    %c0_3 = arith.constant 0 : index
    %c0_4 = arith.constant 0 : index
    %2 = vector.load %arg3[%c0_2, %c0_3, %c0_4] : memref<1x17x128xf32, #tpu.memory_space<vmem>>, vector<1x1x128xf32>
    %3 = vector.shape_cast %2 : vector<1x1x128xf32> to vector<1x128xf32>
    %4 = arith.addf %1, %3 : vector<1x128xf32>
    %c0_5 = arith.constant 0 : index
    %c0_6 = arith.constant 0 : index
    %c0_7 = arith.constant 0 : index
    %5 = vector.load %arg4[%c0_5, %c0_6, %c0_7] : memref<1x24x128xf32, #tpu.memory_space<vmem>>, vector<1x1x128xf32>
    %6 = vector.shape_cast %5 : vector<1x1x128xf32> to vector<1x128xf32>
    %7 = vector.shape_cast %4 : vector<1x128xf32> to vector<1x1x128xf32>
    tpu.vector_store %arg4[%c0_5, %c0_6, %c0_7], %7 {strides = array<i32>} : memref<1x24x128xf32, #tpu.memory_space<vmem>>, vector<1x1x128xf32>,
    %c0_8 = arith.constant 0 : index
    %c0_9 = arith.constant 0 : index
    %c0_10 = arith.constant 0 : index
    %8 = vector.load %arg1[%c0_8, %c0_9, %c0_10] : memref<1x16x128xf32, #tpu.memory_space<vmem>>, vector<1x16x128xf32>
    %9 = vector.shape_cast %8 : vector<1x16x128xf32> to vector<16x128xf32>
    %c0_11 = arith.constant 0 : index
    %c1 = arith.constant 1 : index
    %c0_12 = arith.constant 0 : index
    %10 = vector.load %arg3[%c0_11, %c1, %c0_12] : memref<1x17x128xf32, #tpu.memory_space<vmem>>, vector<1x16x128xf32>
    %11 = vector.shape_cast %10 : vector<1x16x128xf32> to vector<16x128xf32>
    %12 = arith.addf %9, %11 : vector<16x128xf32>
    %c0_13 = arith.constant 0 : index
    %c1_14 = arith.constant 1 : index
    %c0_15 = arith.constant 0 : index
    %13 = vector.load %arg4[%c0_13, %c1_14, %c0_15] : memref<1x24x128xf32, #tpu.memory_space<vmem>>, vector<1x16x128xf32>
    %14 = vector.shape_cast %13 : vector<1x16x128xf32> to vector<16x128xf32>
    %15 = vector.shape_cast %12 : vector<16x128xf32> to vector<1x16x128xf32>
    tpu.vector_store %arg4[%c0_13, %c1_14, %c0_15], %15 {strides = array<i32>} : memref<1x24x128xf32, #tpu.memory_space<vmem>>, vector<1x16x128xf32>,
    %cst = arith.constant 0.000000e+00 : f32
    %16 = vector.broadcast %cst : f32 to vector<7x128xf32>
    %c0_16 = arith.constant 0 : index
    %c17 = arith.constant 17 : index
    %c0_17 = arith.constant 0 : index
    %17 = vector.load %arg4[%c0_16, %c17, %c0_17] : memref<1x24x128xf32, #tpu.memory_space<vmem>>, vector<1x7x128xf32>
    %18 = vector.shape_cast %17 : vector<1x7x128xf32> to vector<7x128xf32>
    %19 = vector.shape_cast %16 : vector<7x128xf32> to vector<1x7x128xf32>
    tpu.vector_store %arg4[%c0_16, %c17, %c0_17], %19 {strides = array<i32>} : memref<1x24x128xf32, #tpu.memory_space<vmem>>, vector<1x7x128xf32>,
    return
  }
  func.func @transform_0(%arg0: i32) -> (i32, i32, i32) {
    %c0_i32 = arith.constant 0 : i32
    %c0_i32_0 = arith.constant 0 : i32
    %c0_i32_1 = arith.constant 0 : i32
    return %arg0, %c0_i32, %c0_i32_0 : i32, i32, i32
  }
  func.func @transform_1(%arg0: i32) -> (i32, i32, i32) {
    %c0_i32 = arith.constant 0 : i32
    %c0_i32_0 = arith.constant 0 : i32
    %c0_i32_1 = arith.constant 0 : i32
    %c0_i32_2 = arith.constant 0 : i32
    return %c0_i32, %c0_i32_0, %c0_i32_1 : i32, i32, i32
  }
  func.func @transform_2(%arg0: i32) -> (i32, i32, i32) {
    %c0_i32 = arith.constant 0 : i32
    %c0_i32_0 = arith.constant 0 : i32
    %c0_i32_1 = arith.constant 0 : i32
    %c0_i32_2 = arith.constant 0 : i32
    return %c0_i32, %c0_i32_0, %c0_i32_1 : i32, i32, i32
  }
  func.func @transform_3(%arg0: i32) -> (i32, i32, i32) {
    %c0_i32 = arith.constant 0 : i32
    %c0_i32_0 = arith.constant 0 : i32
    %c0_i32_1 = arith.constant 0 : i32
    return %arg0, %c0_i32, %c0_i32_0 : i32, i32, i32
  }
}

module attributes {stable_mosaic.version = 11 : i64} {
  func.func @_attn_kernel(%arg0: i32, %arg1: memref<1x24x384xf32, #tpu.memory_space<vmem>>, %arg2: memref<1x24x128xf32, #tpu.memory_space<vmem>>) attributes {dimension_semantics = [#tpu.dimension_semantics<parallel>], iteration_bounds = array<i64: 2>, scalar_prefetch = 0 : i64, scratch_operands = 0 : i64, tpu.core_type = #tpu.core_type<tc>, window_params = [{transform_indices = @transform_0, window_bounds = array<i64: 1, 24, 384>}, {transform_indices = @transform_1, window_bounds = array<i64: 1, 24, 128>}]} {
    %c0 = arith.constant 0 : index
    %c0_0 = arith.constant 0 : index
    %c0_1 = arith.constant 0 : index
    %0 = vector.load %arg1[%c0, %c0_0, %c0_1] : memref<1x24x384xf32, #tpu.memory_space<vmem>>, vector<1x24x384xf32>
    %1 = vector.shape_cast %0 : vector<1x24x384xf32> to vector<24x384xf32>
    %2 = arith.truncf %1 : vector<24x384xf32> to vector<24x384xbf16>
    %3 = tpu.iota {dimensions = array<i32: 1>} : vector<24x24xi32>
    %c17_i32 = arith.constant 17 : i32
    %4 = vector.broadcast %c17_i32 : i32 to vector<24x24xi32>
    %5 = arith.cmpi slt, %3, %4 : vector<24x24xi32>
    %6 = vector.extract_strided_slice %2 {offsets = [0, 0], sizes = [24, 32], strides = [1, 1]} : vector<24x384xbf16> to vector<24x32xbf16>
    %7 = vector.extract_strided_slice %2 {offsets = [0, 128], sizes = [24, 32], strides = [1, 1]} : vector<24x384xbf16> to vector<24x32xbf16>
    %8 = vector.extract_strided_slice %2 {offsets = [0, 256], sizes = [24, 32], strides = [1, 1]} : vector<24x384xbf16> to vector<24x32xbf16>
    %cst = arith.constant dense<0.000000e+00> : vector<24x24xf32>
    %9 = tpu.matmul %6, %7, %cst {dimension_numbers = #tpu.dot_dimension_numbers<[1], [1], [0], [0], [0, 0, 1, 0], [], []>} : vector<24x32xbf16>, vector<24x32xbf16>, vector<24x24xf32> -> vector<24x24xf32>
    %cst_2 = arith.constant 0.176776692 : f32
    %10 = vector.broadcast %cst_2 : f32 to vector<24x24xf32>
    %11 = arith.mulf %9, %10 : vector<24x24xf32>
    %cst_3 = arith.constant -1.000000e+30 : f32
    %12 = vector.broadcast %cst_3 : f32 to vector<24x24xf32>
    %13 = arith.select %5, %11, %12 : vector<24x24xi1>, vector<24x24xf32>
    %cst_4 = arith.constant dense<0xFF800000> : vector<24xf32>
    %14 = vector.multi_reduction <maximumf>, %13, %cst_4 [1] : vector<24x24xf32> to vector<24xf32>
    %15 = vector.shape_cast %14 : vector<24xf32> to vector<24x1xf32>
    %16 = vector.broadcast %15 : vector<24x1xf32> to vector<24x24xf32>
    %17 = arith.subf %13, %16 : vector<24x24xf32>
    %18 = math.exp %17 : vector<24x24xf32>
    %cst_5 = arith.constant dense<0.000000e+00> : vector<24xf32>
    %19 = vector.multi_reduction <add>, %18, %cst_5 [1] : vector<24x24xf32> to vector<24xf32>
    %20 = vector.shape_cast %19 : vector<24xf32> to vector<24x1xf32>
    %21 = tpu.reciprocal %20 {approx = true} : vector<24x1xf32> -> vector<24x1xf32>
    %22 = arith.truncf %18 : vector<24x24xf32> to vector<24x24xbf16>
    %cst_6 = arith.constant dense<0.000000e+00> : vector<24x32xf32>
    %23 = tpu.matmul %22, %8, %cst_6 {dimension_numbers = #tpu.dot_dimension_numbers<[1], [0], [0], [1], [0, 0, 1, 1], [], []>} : vector<24x24xbf16>, vector<24x32xbf16>, vector<24x32xf32> -> vector<24x32xf32>
    %24 = vector.broadcast %21 : vector<24x1xf32> to vector<24x32xf32>
    %25 = arith.mulf %23, %24 : vector<24x32xf32>
    %c0_7 = arith.constant 0 : index
    %c0_8 = arith.constant 0 : index
    %c0_9 = arith.constant 0 : index
    %26 = vector.load %arg2[%c0_7, %c0_8, %c0_9] : memref<1x24x128xf32, #tpu.memory_space<vmem>>, vector<1x24x32xf32>
    %27 = vector.shape_cast %26 : vector<1x24x32xf32> to vector<24x32xf32>
    %28 = vector.shape_cast %25 : vector<24x32xf32> to vector<1x24x32xf32>
    tpu.vector_store %arg2[%c0_7, %c0_8, %c0_9], %28 {strides = array<i32>} : memref<1x24x128xf32, #tpu.memory_space<vmem>>, vector<1x24x32xf32>,
    %29 = vector.extract_strided_slice %2 {offsets = [0, 32], sizes = [24, 32], strides = [1, 1]} : vector<24x384xbf16> to vector<24x32xbf16>
    %30 = vector.extract_strided_slice %2 {offsets = [0, 160], sizes = [24, 32], strides = [1, 1]} : vector<24x384xbf16> to vector<24x32xbf16>
    %31 = vector.extract_strided_slice %2 {offsets = [0, 288], sizes = [24, 32], strides = [1, 1]} : vector<24x384xbf16> to vector<24x32xbf16>
    %cst_10 = arith.constant dense<0.000000e+00> : vector<24x24xf32>
    %32 = tpu.matmul %29, %30, %cst_10 {dimension_numbers = #tpu.dot_dimension_numbers<[1], [1], [0], [0], [0, 0, 1, 0], [], []>} : vector<24x32xbf16>, vector<24x32xbf16>, vector<24x24xf32> -> vector<24x24xf32>
    %cst_11 = arith.constant 0.176776692 : f32
    %33 = vector.broadcast %cst_11 : f32 to vector<24x24xf32>
    %34 = arith.mulf %32, %33 : vector<24x24xf32>
    %cst_12 = arith.constant -1.000000e+30 : f32
    %35 = vector.broadcast %cst_12 : f32 to vector<24x24xf32>
    %36 = arith.select %5, %34, %35 : vector<24x24xi1>, vector<24x24xf32>
    %cst_13 = arith.constant dense<0xFF800000> : vector<24xf32>
    %37 = vector.multi_reduction <maximumf>, %36, %cst_13 [1] : vector<24x24xf32> to vector<24xf32>
    %38 = vector.shape_cast %37 : vector<24xf32> to vector<24x1xf32>
    %39 = vector.broadcast %38 : vector<24x1xf32> to vector<24x24xf32>
    %40 = arith.subf %36, %39 : vector<24x24xf32>
    %41 = math.exp %40 : vector<24x24xf32>
    %cst_14 = arith.constant dense<0.000000e+00> : vector<24xf32>
    %42 = vector.multi_reduction <add>, %41, %cst_14 [1] : vector<24x24xf32> to vector<24xf32>
    %43 = vector.shape_cast %42 : vector<24xf32> to vector<24x1xf32>
    %44 = tpu.reciprocal %43 {approx = true} : vector<24x1xf32> -> vector<24x1xf32>
    %45 = arith.truncf %41 : vector<24x24xf32> to vector<24x24xbf16>
    %cst_15 = arith.constant dense<0.000000e+00> : vector<24x32xf32>
    %46 = tpu.matmul %45, %31, %cst_15 {dimension_numbers = #tpu.dot_dimension_numbers<[1], [0], [0], [1], [0, 0, 1, 1], [], []>} : vector<24x24xbf16>, vector<24x32xbf16>, vector<24x32xf32> -> vector<24x32xf32>
    %47 = vector.broadcast %44 : vector<24x1xf32> to vector<24x32xf32>
    %48 = arith.mulf %46, %47 : vector<24x32xf32>
    %c0_16 = arith.constant 0 : index
    %c0_17 = arith.constant 0 : index
    %c32 = arith.constant 32 : index
    %49 = vector.load %arg2[%c0_16, %c0_17, %c32] : memref<1x24x128xf32, #tpu.memory_space<vmem>>, vector<1x24x32xf32>
    %50 = vector.shape_cast %49 : vector<1x24x32xf32> to vector<24x32xf32>
    %51 = vector.shape_cast %48 : vector<24x32xf32> to vector<1x24x32xf32>
    tpu.vector_store %arg2[%c0_16, %c0_17, %c32], %51 {strides = array<i32>} : memref<1x24x128xf32, #tpu.memory_space<vmem>>, vector<1x24x32xf32>,
    %52 = vector.extract_strided_slice %2 {offsets = [0, 64], sizes = [24, 32], strides = [1, 1]} : vector<24x384xbf16> to vector<24x32xbf16>
    %53 = vector.extract_strided_slice %2 {offsets = [0, 192], sizes = [24, 32], strides = [1, 1]} : vector<24x384xbf16> to vector<24x32xbf16>
    %54 = vector.extract_strided_slice %2 {offsets = [0, 320], sizes = [24, 32], strides = [1, 1]} : vector<24x384xbf16> to vector<24x32xbf16>
    %cst_18 = arith.constant dense<0.000000e+00> : vector<24x24xf32>
    %55 = tpu.matmul %52, %53, %cst_18 {dimension_numbers = #tpu.dot_dimension_numbers<[1], [1], [0], [0], [0, 0, 1, 0], [], []>} : vector<24x32xbf16>, vector<24x32xbf16>, vector<24x24xf32> -> vector<24x24xf32>
    %cst_19 = arith.constant 0.176776692 : f32
    %56 = vector.broadcast %cst_19 : f32 to vector<24x24xf32>
    %57 = arith.mulf %55, %56 : vector<24x24xf32>
    %cst_20 = arith.constant -1.000000e+30 : f32
    %58 = vector.broadcast %cst_20 : f32 to vector<24x24xf32>
    %59 = arith.select %5, %57, %58 : vector<24x24xi1>, vector<24x24xf32>
    %cst_21 = arith.constant dense<0xFF800000> : vector<24xf32>
    %60 = vector.multi_reduction <maximumf>, %59, %cst_21 [1] : vector<24x24xf32> to vector<24xf32>
    %61 = vector.shape_cast %60 : vector<24xf32> to vector<24x1xf32>
    %62 = vector.broadcast %61 : vector<24x1xf32> to vector<24x24xf32>
    %63 = arith.subf %59, %62 : vector<24x24xf32>
    %64 = math.exp %63 : vector<24x24xf32>
    %cst_22 = arith.constant dense<0.000000e+00> : vector<24xf32>
    %65 = vector.multi_reduction <add>, %64, %cst_22 [1] : vector<24x24xf32> to vector<24xf32>
    %66 = vector.shape_cast %65 : vector<24xf32> to vector<24x1xf32>
    %67 = tpu.reciprocal %66 {approx = true} : vector<24x1xf32> -> vector<24x1xf32>
    %68 = arith.truncf %64 : vector<24x24xf32> to vector<24x24xbf16>
    %cst_23 = arith.constant dense<0.000000e+00> : vector<24x32xf32>
    %69 = tpu.matmul %68, %54, %cst_23 {dimension_numbers = #tpu.dot_dimension_numbers<[1], [0], [0], [1], [0, 0, 1, 1], [], []>} : vector<24x24xbf16>, vector<24x32xbf16>, vector<24x32xf32> -> vector<24x32xf32>
    %70 = vector.broadcast %67 : vector<24x1xf32> to vector<24x32xf32>
    %71 = arith.mulf %69, %70 : vector<24x32xf32>
    %c0_24 = arith.constant 0 : index
    %c0_25 = arith.constant 0 : index
    %c64 = arith.constant 64 : index
    %72 = vector.load %arg2[%c0_24, %c0_25, %c64] : memref<1x24x128xf32, #tpu.memory_space<vmem>>, vector<1x24x32xf32>
    %73 = vector.shape_cast %72 : vector<1x24x32xf32> to vector<24x32xf32>
    %74 = vector.shape_cast %71 : vector<24x32xf32> to vector<1x24x32xf32>
    tpu.vector_store %arg2[%c0_24, %c0_25, %c64], %74 {strides = array<i32>} : memref<1x24x128xf32, #tpu.memory_space<vmem>>, vector<1x24x32xf32>,
    %75 = vector.extract_strided_slice %2 {offsets = [0, 96], sizes = [24, 32], strides = [1, 1]} : vector<24x384xbf16> to vector<24x32xbf16>
    %76 = vector.extract_strided_slice %2 {offsets = [0, 224], sizes = [24, 32], strides = [1, 1]} : vector<24x384xbf16> to vector<24x32xbf16>
    %77 = vector.extract_strided_slice %2 {offsets = [0, 352], sizes = [24, 32], strides = [1, 1]} : vector<24x384xbf16> to vector<24x32xbf16>
    %cst_26 = arith.constant dense<0.000000e+00> : vector<24x24xf32>
    %78 = tpu.matmul %75, %76, %cst_26 {dimension_numbers = #tpu.dot_dimension_numbers<[1], [1], [0], [0], [0, 0, 1, 0], [], []>} : vector<24x32xbf16>, vector<24x32xbf16>, vector<24x24xf32> -> vector<24x24xf32>
    %cst_27 = arith.constant 0.176776692 : f32
    %79 = vector.broadcast %cst_27 : f32 to vector<24x24xf32>
    %80 = arith.mulf %78, %79 : vector<24x24xf32>
    %cst_28 = arith.constant -1.000000e+30 : f32
    %81 = vector.broadcast %cst_28 : f32 to vector<24x24xf32>
    %82 = arith.select %5, %80, %81 : vector<24x24xi1>, vector<24x24xf32>
    %cst_29 = arith.constant dense<0xFF800000> : vector<24xf32>
    %83 = vector.multi_reduction <maximumf>, %82, %cst_29 [1] : vector<24x24xf32> to vector<24xf32>
    %84 = vector.shape_cast %83 : vector<24xf32> to vector<24x1xf32>
    %85 = vector.broadcast %84 : vector<24x1xf32> to vector<24x24xf32>
    %86 = arith.subf %82, %85 : vector<24x24xf32>
    %87 = math.exp %86 : vector<24x24xf32>
    %cst_30 = arith.constant dense<0.000000e+00> : vector<24xf32>
    %88 = vector.multi_reduction <add>, %87, %cst_30 [1] : vector<24x24xf32> to vector<24xf32>
    %89 = vector.shape_cast %88 : vector<24xf32> to vector<24x1xf32>
    %90 = tpu.reciprocal %89 {approx = true} : vector<24x1xf32> -> vector<24x1xf32>
    %91 = arith.truncf %87 : vector<24x24xf32> to vector<24x24xbf16>
    %cst_31 = arith.constant dense<0.000000e+00> : vector<24x32xf32>
    %92 = tpu.matmul %91, %77, %cst_31 {dimension_numbers = #tpu.dot_dimension_numbers<[1], [0], [0], [1], [0, 0, 1, 1], [], []>} : vector<24x24xbf16>, vector<24x32xbf16>, vector<24x32xf32> -> vector<24x32xf32>
    %93 = vector.broadcast %90 : vector<24x1xf32> to vector<24x32xf32>
    %94 = arith.mulf %92, %93 : vector<24x32xf32>
    %c0_32 = arith.constant 0 : index
    %c0_33 = arith.constant 0 : index
    %c96 = arith.constant 96 : index
    %95 = vector.load %arg2[%c0_32, %c0_33, %c96] : memref<1x24x128xf32, #tpu.memory_space<vmem>>, vector<1x24x32xf32>
    %96 = vector.shape_cast %95 : vector<1x24x32xf32> to vector<24x32xf32>
    %97 = vector.shape_cast %94 : vector<24x32xf32> to vector<1x24x32xf32>
    tpu.vector_store %arg2[%c0_32, %c0_33, %c96], %97 {strides = array<i32>} : memref<1x24x128xf32, #tpu.memory_space<vmem>>, vector<1x24x32xf32>,
    return
  }
  func.func @transform_0(%arg0: i32) -> (i32, i32, i32) {
    %c0_i32 = arith.constant 0 : i32
    %c0_i32_0 = arith.constant 0 : i32
    %c0_i32_1 = arith.constant 0 : i32
    return %arg0, %c0_i32, %c0_i32_0 : i32, i32, i32
  }
  func.func @transform_1(%arg0: i32) -> (i32, i32, i32) {
    %c0_i32 = arith.constant 0 : i32
    %c0_i32_0 = arith.constant 0 : i32
    %c0_i32_1 = arith.constant 0 : i32
    return %arg0, %c0_i32, %c0_i32_0 : i32, i32, i32
  }
}

module attributes {stable_mosaic.version = 11 : i64} {
  func.func @_fused_linear_kernel(%arg0: i32, %arg1: i32, %arg2: i32, %arg3: memref<24x128xf32, #tpu.memory_space<vmem>>, %arg4: memref<128x256xbf16, #tpu.memory_space<vmem>>, %arg5: memref<1x256xf32, #tpu.memory_space<vmem>>, %arg6: memref<1x128xf32, #tpu.memory_space<vmem>>, %arg7: memref<1x128xf32, #tpu.memory_space<vmem>>, %arg8: memref<24x256xf32, #tpu.memory_space<vmem>>, %arg9: memref<24x128xbf16, #tpu.memory_space<vmem>>) attributes {dimension_semantics = [#tpu.dimension_semantics<parallel>, #tpu.dimension_semantics<arbitrary>, #tpu.dimension_semantics<arbitrary>], iteration_bounds = array<i64: 2, 1, 1>, scalar_prefetch = 0 : i64, scratch_operands = 1 : i64, tpu.core_type = #tpu.core_type<tc>, window_params = [{transform_indices = @transform_0, window_bounds = array<i64: 24, 128>}, {transform_indices = @transform_1, window_bounds = array<i64: 128, 256>}, {transform_indices = @transform_2, window_bounds = array<i64: 1, 256>}, {transform_indices = @transform_3, window_bounds = array<i64: 1, 128>}, {transform_indices = @transform_4, window_bounds = array<i64: 1, 128>}, {transform_indices = @transform_5, window_bounds = array<i64: 24, 256>}]} {
    %c0_i32 = arith.constant 0 : i32
    %0 = arith.cmpi eq, %arg1, %c0_i32 : i32
    %1 = arith.extui %0 : i1 to i32
    %c0_i32_0 = arith.constant 0 : i32
    %2 = arith.cmpi ne, %1, %c0_i32_0 : i32
    scf.if %2 {
      %c0_11 = arith.constant 0 : index
      %c0_12 = arith.constant 0 : index
      %18 = vector.load %arg3[%c0_11, %c0_12] : memref<24x128xf32, #tpu.memory_space<vmem>>, vector<24x128xf32>
      %cst_13 = arith.constant dense<0.000000e+00> : vector<24xf32>
      %19 = vector.multi_reduction <add>, %18, %cst_13 [1] : vector<24x128xf32> to vector<24xf32>
      %20 = vector.shape_cast %19 : vector<24xf32> to vector<24x1xf32>
      %cst_14 = arith.constant 1.280000e+02 : f32
      %21 = vector.broadcast %cst_14 : f32 to vector<24x1xf32>
      %22 = arith.divf %20, %21 : vector<24x1xf32>
      %23 = vector.broadcast %22 : vector<24x1xf32> to vector<24x128xf32>
      %24 = arith.subf %18, %23 : vector<24x128xf32>
      %25 = arith.mulf %24, %24 : vector<24x128xf32>
      %cst_15 = arith.constant dense<0.000000e+00> : vector<24xf32>
      %26 = vector.multi_reduction <add>, %25, %cst_15 [1] : vector<24x128xf32> to vector<24xf32>
      %27 = vector.shape_cast %26 : vector<24xf32> to vector<24x1xf32>
      %cst_16 = arith.constant 1.280000e+02 : f32
      %28 = vector.broadcast %cst_16 : f32 to vector<24x1xf32>
      %29 = arith.divf %27, %28 : vector<24x1xf32>
      %30 = vector.broadcast %22 : vector<24x1xf32> to vector<24x128xf32>
      %31 = arith.subf %18, %30 : vector<24x128xf32>
      %cst_17 = arith.constant 9.99999974E-6 : f32
      %32 = vector.broadcast %cst_17 : f32 to vector<24x1xf32>
      %33 = arith.addf %29, %32 : vector<24x1xf32>
      %34 = math.rsqrt %33 : vector<24x1xf32>
      %35 = vector.broadcast %34 : vector<24x1xf32> to vector<24x128xf32>
      %36 = arith.mulf %31, %35 : vector<24x128xf32>
      %c0_18 = arith.constant 0 : index
      %c0_19 = arith.constant 0 : index
      %37 = vector.load %arg6[%c0_18, %c0_19] : memref<1x128xf32, #tpu.memory_space<vmem>>, vector<1x128xf32>
      %38 = vector.broadcast %37 : vector<1x128xf32> to vector<24x128xf32>
      %39 = arith.mulf %36, %38 : vector<24x128xf32>
      %c0_20 = arith.constant 0 : index
      %c0_21 = arith.constant 0 : index
      %40 = vector.load %arg7[%c0_20, %c0_21] : memref<1x128xf32, #tpu.memory_space<vmem>>, vector<1x128xf32>
      %41 = vector.broadcast %40 : vector<1x128xf32> to vector<24x128xf32>
      %42 = arith.addf %39, %41 : vector<24x128xf32>
      %43 = arith.truncf %42 : vector<24x128xf32> to vector<24x128xbf16>
      %c0_22 = arith.constant 0 : index
      %c0_23 = arith.constant 0 : index
      %44 = vector.load %arg9[%c0_22, %c0_23] : memref<24x128xbf16, #tpu.memory_space<vmem>>, vector<24x128xbf16>
      tpu.vector_store %arg9[%c0_22, %c0_23], %43 {strides = array<i32>} : memref<24x128xbf16, #tpu.memory_space<vmem>>, vector<24x128xbf16>,
    } else {
    }
    %c0 = arith.constant 0 : index
    %c0_1 = arith.constant 0 : index
    %3 = vector.load %arg9[%c0, %c0_1] : memref<24x128xbf16, #tpu.memory_space<vmem>>, vector<24x128xbf16>
    %c0_2 = arith.constant 0 : index
    %c0_3 = arith.constant 0 : index
    %4 = vector.load %arg4[%c0_2, %c0_3] : memref<128x256xbf16, #tpu.memory_space<vmem>>, vector<128x256xbf16>
    %cst = arith.constant dense<0.000000e+00> : vector<24x256xf32>
    %5 = tpu.matmul %3, %4, %cst {dimension_numbers = #tpu.dot_dimension_numbers<[1], [0], [0], [1], [0, 0, 1, 1], [], []>} : vector<24x128xbf16>, vector<128x256xbf16>, vector<24x256xf32> -> vector<24x256xf32>
    %c0_4 = arith.constant 0 : index
    %c0_5 = arith.constant 0 : index
    %6 = vector.load %arg5[%c0_4, %c0_5] : memref<1x256xf32, #tpu.memory_space<vmem>>, vector<1x256xf32>
    %7 = vector.broadcast %6 : vector<1x256xf32> to vector<24x256xf32>
    %8 = arith.addf %5, %7 : vector<24x256xf32>
    %cst_6 = arith.constant 5.000000e-01 : f32
    %9 = vector.broadcast %cst_6 : f32 to vector<24x256xf32>
    %10 = arith.mulf %9, %8 : vector<24x256xf32>
    %cst_7 = arith.constant 0.707106769 : f32
    %11 = vector.broadcast %cst_7 : f32 to vector<24x256xf32>
    %12 = arith.mulf %8, %11 : vector<24x256xf32>
    %13 = math.erf %12 : vector<24x256xf32>
    %cst_8 = arith.constant 1.000000e+00 : f32
    %14 = vector.broadcast %cst_8 : f32 to vector<24x256xf32>
    %15 = arith.addf %14, %13 : vector<24x256xf32>
    %16 = arith.mulf %10, %15 : vector<24x256xf32>
    %c0_9 = arith.constant 0 : index
    %c0_10 = arith.constant 0 : index
    %17 = vector.load %arg8[%c0_9, %c0_10] : memref<24x256xf32, #tpu.memory_space<vmem>>, vector<24x256xf32>
    tpu.vector_store %arg8[%c0_9, %c0_10], %16 {strides = array<i32>} : memref<24x256xf32, #tpu.memory_space<vmem>>, vector<24x256xf32>,
    return
  }
  func.func @transform_0(%arg0: i32, %arg1: i32, %arg2: i32) -> (i32, i32) {
    %c0_i32 = arith.constant 0 : i32
    return %arg0, %arg2 : i32, i32
  }
  func.func @transform_1(%arg0: i32, %arg1: i32, %arg2: i32) -> (i32, i32) {
    %c0_i32 = arith.constant 0 : i32
    return %arg2, %arg1 : i32, i32
  }
  func.func @transform_2(%arg0: i32, %arg1: i32, %arg2: i32) -> (i32, i32) {
    %c0_i32 = arith.constant 0 : i32
    %c0_i32_0 = arith.constant 0 : i32
    return %c0_i32, %arg1 : i32, i32
  }
  func.func @transform_3(%arg0: i32, %arg1: i32, %arg2: i32) -> (i32, i32) {
    %c0_i32 = arith.constant 0 : i32
    %c0_i32_0 = arith.constant 0 : i32
    return %c0_i32, %arg2 : i32, i32
  }
  func.func @transform_4(%arg0: i32, %arg1: i32, %arg2: i32) -> (i32, i32) {
    %c0_i32 = arith.constant 0 : i32
    %c0_i32_0 = arith.constant 0 : i32
    return %c0_i32, %arg2 : i32, i32
  }
  func.func @transform_5(%arg0: i32, %arg1: i32, %arg2: i32) -> (i32, i32) {
    %c0_i32 = arith.constant 0 : i32
    return %arg0, %arg1 : i32, i32
  }
}

module attributes {stable_mosaic.version = 11 : i64} {
  func.func @_fused_linear_kernel(%arg0: i32, %arg1: i32, %arg2: i32, %arg3: memref<24x256xf32, #tpu.memory_space<vmem>>, %arg4: memref<256x128xbf16, #tpu.memory_space<vmem>>, %arg5: memref<1x128xf32, #tpu.memory_space<vmem>>, %arg6: memref<24x128xf32, #tpu.memory_space<vmem>>, %arg7: memref<24x128xf32, #tpu.memory_space<vmem>>) attributes {dimension_semantics = [#tpu.dimension_semantics<parallel>, #tpu.dimension_semantics<parallel>, #tpu.dimension_semantics<arbitrary>], iteration_bounds = array<i64: 2, 1, 1>, scalar_prefetch = 0 : i64, scratch_operands = 0 : i64, tpu.core_type = #tpu.core_type<tc>, window_params = [{transform_indices = @transform_0, window_bounds = array<i64: 24, 256>}, {transform_indices = @transform_1, window_bounds = array<i64: 256, 128>}, {transform_indices = @transform_2, window_bounds = array<i64: 1, 128>}, {transform_indices = @transform_3, window_bounds = array<i64: 24, 128>}, {transform_indices = @transform_4, window_bounds = array<i64: 24, 128>}]} {
    %c0 = arith.constant 0 : index
    %c0_0 = arith.constant 0 : index
    %0 = vector.load %arg3[%c0, %c0_0] : memref<24x256xf32, #tpu.memory_space<vmem>>, vector<24x256xf32>
    %1 = arith.truncf %0 : vector<24x256xf32> to vector<24x256xbf16>
    %c0_1 = arith.constant 0 : index
    %c0_2 = arith.constant 0 : index
    %2 = vector.load %arg4[%c0_1, %c0_2] : memref<256x128xbf16, #tpu.memory_space<vmem>>, vector<256x128xbf16>
    %cst = arith.constant dense<0.000000e+00> : vector<24x128xf32>
    %3 = tpu.matmul %1, %2, %cst {dimension_numbers = #tpu.dot_dimension_numbers<[1], [0], [0], [1], [0, 0, 1, 1], [], []>} : vector<24x256xbf16>, vector<256x128xbf16>, vector<24x128xf32> -> vector<24x128xf32>
    %c0_3 = arith.constant 0 : index
    %c0_4 = arith.constant 0 : index
    %4 = vector.load %arg5[%c0_3, %c0_4] : memref<1x128xf32, #tpu.memory_space<vmem>>, vector<1x128xf32>
    %5 = vector.broadcast %4 : vector<1x128xf32> to vector<24x128xf32>
    %6 = arith.addf %3, %5 : vector<24x128xf32>
    %c0_5 = arith.constant 0 : index
    %c0_6 = arith.constant 0 : index
    %7 = vector.load %arg6[%c0_5, %c0_6] : memref<24x128xf32, #tpu.memory_space<vmem>>, vector<24x128xf32>
    %8 = arith.addf %6, %7 : vector<24x128xf32>
    %c0_7 = arith.constant 0 : index
    %c0_8 = arith.constant 0 : index
    %9 = vector.load %arg7[%c0_7, %c0_8] : memref<24x128xf32, #tpu.memory_space<vmem>>, vector<24x128xf32>
    tpu.vector_store %arg7[%c0_7, %c0_8], %8 {strides = array<i32>} : memref<24x128xf32, #tpu.memory_space<vmem>>, vector<24x128xf32>,
    return
  }
  func.func @transform_0(%arg0: i32, %arg1: i32, %arg2: i32) -> (i32, i32) {
    %c0_i32 = arith.constant 0 : i32
    return %arg0, %arg2 : i32, i32
  }
  func.func @transform_1(%arg0: i32, %arg1: i32, %arg2: i32) -> (i32, i32) {
    %c0_i32 = arith.constant 0 : i32
    return %arg2, %arg1 : i32, i32
  }
  func.func @transform_2(%arg0: i32, %arg1: i32, %arg2: i32) -> (i32, i32) {
    %c0_i32 = arith.constant 0 : i32
    %c0_i32_0 = arith.constant 0 : i32
    return %c0_i32, %arg1 : i32, i32
  }
  func.func @transform_3(%arg0: i32, %arg1: i32, %arg2: i32) -> (i32, i32) {
    %c0_i32 = arith.constant 0 : i32
    return %arg0, %arg1 : i32, i32
  }
  func.func @transform_4(%arg0: i32, %arg1: i32, %arg2: i32) -> (i32, i32) {
    %c0_i32 = arith.constant 0 : i32
    return %arg0, %arg1 : i32, i32
  }
}

module attributes {stable_mosaic.version = 11 : i64} {
  func.func @_fused_linear_kernel(%arg0: i32, %arg1: i32, %arg2: i32, %arg3: memref<2x128xf32, #tpu.memory_space<vmem>>, %arg4: memref<128x128xbf16, #tpu.memory_space<vmem>>, %arg5: memref<1x128xf32, #tpu.memory_space<vmem>>, %arg6: memref<1x128xf32, #tpu.memory_space<vmem>>, %arg7: memref<1x128xf32, #tpu.memory_space<vmem>>, %arg8: memref<2x128xf32, #tpu.memory_space<vmem>>, %arg9: memref<2x128xbf16, #tpu.memory_space<vmem>>) attributes {dimension_semantics = [#tpu.dimension_semantics<parallel>, #tpu.dimension_semantics<arbitrary>, #tpu.dimension_semantics<arbitrary>], iteration_bounds = array<i64: 1, 1, 1>, scalar_prefetch = 0 : i64, scratch_operands = 1 : i64, tpu.core_type = #tpu.core_type<tc>, window_params = [{transform_indices = @transform_0, window_bounds = array<i64: 2, 128>}, {transform_indices = @transform_1, window_bounds = array<i64: 128, 128>}, {transform_indices = @transform_2, window_bounds = array<i64: 1, 128>}, {transform_indices = @transform_3, window_bounds = array<i64: 1, 128>}, {transform_indices = @transform_4, window_bounds = array<i64: 1, 128>}, {transform_indices = @transform_5, window_bounds = array<i64: 2, 128>}]} {
    %c0_i32 = arith.constant 0 : i32
    %0 = arith.cmpi eq, %arg1, %c0_i32 : i32
    %1 = arith.extui %0 : i1 to i32
    %c0_i32_0 = arith.constant 0 : i32
    %2 = arith.cmpi ne, %1, %c0_i32_0 : i32
    scf.if %2 {
      %c0_8 = arith.constant 0 : index
      %c0_9 = arith.constant 0 : index
      %10 = vector.load %arg3[%c0_8, %c0_9] : memref<2x128xf32, #tpu.memory_space<vmem>>, vector<2x128xf32>
      %cst_10 = arith.constant dense<0.000000e+00> : vector<2xf32>
      %11 = vector.multi_reduction <add>, %10, %cst_10 [1] : vector<2x128xf32> to vector<2xf32>
      %12 = vector.shape_cast %11 : vector<2xf32> to vector<2x1xf32>
      %cst_11 = arith.constant 1.280000e+02 : f32
      %13 = vector.broadcast %cst_11 : f32 to vector<2x1xf32>
      %14 = arith.divf %12, %13 : vector<2x1xf32>
      %15 = vector.broadcast %14 : vector<2x1xf32> to vector<2x128xf32>
      %16 = arith.subf %10, %15 : vector<2x128xf32>
      %17 = arith.mulf %16, %16 : vector<2x128xf32>
      %cst_12 = arith.constant dense<0.000000e+00> : vector<2xf32>
      %18 = vector.multi_reduction <add>, %17, %cst_12 [1] : vector<2x128xf32> to vector<2xf32>
      %19 = vector.shape_cast %18 : vector<2xf32> to vector<2x1xf32>
      %cst_13 = arith.constant 1.280000e+02 : f32
      %20 = vector.broadcast %cst_13 : f32 to vector<2x1xf32>
      %21 = arith.divf %19, %20 : vector<2x1xf32>
      %22 = vector.broadcast %14 : vector<2x1xf32> to vector<2x128xf32>
      %23 = arith.subf %10, %22 : vector<2x128xf32>
      %cst_14 = arith.constant 9.99999974E-6 : f32
      %24 = vector.broadcast %cst_14 : f32 to vector<2x1xf32>
      %25 = arith.addf %21, %24 : vector<2x1xf32>
      %26 = math.rsqrt %25 : vector<2x1xf32>
      %27 = vector.broadcast %26 : vector<2x1xf32> to vector<2x128xf32>
      %28 = arith.mulf %23, %27 : vector<2x128xf32>
      %c0_15 = arith.constant 0 : index
      %c0_16 = arith.constant 0 : index
      %29 = vector.load %arg6[%c0_15, %c0_16] : memref<1x128xf32, #tpu.memory_space<vmem>>, vector<1x128xf32>
      %30 = vector.broadcast %29 : vector<1x128xf32> to vector<2x128xf32>
      %31 = arith.mulf %28, %30 : vector<2x128xf32>
      %c0_17 = arith.constant 0 : index
      %c0_18 = arith.constant 0 : index
      %32 = vector.load %arg7[%c0_17, %c0_18] : memref<1x128xf32, #tpu.memory_space<vmem>>, vector<1x128xf32>
      %33 = vector.broadcast %32 : vector<1x128xf32> to vector<2x128xf32>
      %34 = arith.addf %31, %33 : vector<2x128xf32>
      %35 = arith.truncf %34 : vector<2x128xf32> to vector<2x128xbf16>
      %c0_19 = arith.constant 0 : index
      %c0_20 = arith.constant 0 : index
      %36 = vector.load %arg9[%c0_19, %c0_20] : memref<2x128xbf16, #tpu.memory_space<vmem>>, vector<2x128xbf16>
      tpu.vector_store %arg9[%c0_19, %c0_20], %35 {strides = array<i32>} : memref<2x128xbf16, #tpu.memory_space<vmem>>, vector<2x128xbf16>,
    } else {
    }
    %c0 = arith.constant 0 : index
    %c0_1 = arith.constant 0 : index
    %3 = vector.load %arg9[%c0, %c0_1] : memref<2x128xbf16, #tpu.memory_space<vmem>>, vector<2x128xbf16>
    %c0_2 = arith.constant 0 : index
    %c0_3 = arith.constant 0 : index
    %4 = vector.load %arg4[%c0_2, %c0_3] : memref<128x128xbf16, #tpu.memory_space<vmem>>, vector<128x128xbf16>
    %cst = arith.constant dense<0.000000e+00> : vector<2x128xf32>
    %5 = tpu.matmul %3, %4, %cst {dimension_numbers = #tpu.dot_dimension_numbers<[1], [0], [0], [1], [0, 0, 1, 1], [], []>} : vector<2x128xbf16>, vector<128x128xbf16>, vector<2x128xf32> -> vector<2x128xf32>
    %c0_4 = arith.constant 0 : index
    %c0_5 = arith.constant 0 : index
    %6 = vector.load %arg5[%c0_4, %c0_5] : memref<1x128xf32, #tpu.memory_space<vmem>>, vector<1x128xf32>
    %7 = vector.broadcast %6 : vector<1x128xf32> to vector<2x128xf32>
    %8 = arith.addf %5, %7 : vector<2x128xf32>
    %c0_6 = arith.constant 0 : index
    %c0_7 = arith.constant 0 : index
    %9 = vector.load %arg8[%c0_6, %c0_7] : memref<2x128xf32, #tpu.memory_space<vmem>>, vector<2x128xf32>
    tpu.vector_store %arg8[%c0_6, %c0_7], %8 {strides = array<i32>} : memref<2x128xf32, #tpu.memory_space<vmem>>, vector<2x128xf32>,
    return
  }
  func.func @transform_0(%arg0: i32, %arg1: i32, %arg2: i32) -> (i32, i32) {
    %c0_i32 = arith.constant 0 : i32
    return %arg0, %arg2 : i32, i32
  }
  func.func @transform_1(%arg0: i32, %arg1: i32, %arg2: i32) -> (i32, i32) {
    %c0_i32 = arith.constant 0 : i32
    return %arg2, %arg1 : i32, i32
  }
  func.func @transform_2(%arg0: i32, %arg1: i32, %arg2: i32) -> (i32, i32) {
    %c0_i32 = arith.constant 0 : i32
    %c0_i32_0 = arith.constant 0 : i32
    return %c0_i32, %arg1 : i32, i32
  }
  func.func @transform_3(%arg0: i32, %arg1: i32, %arg2: i32) -> (i32, i32) {
    %c0_i32 = arith.constant 0 : i32
    %c0_i32_0 = arith.constant 0 : i32
    return %c0_i32, %arg2 : i32, i32
  }
  func.func @transform_4(%arg0: i32, %arg1: i32, %arg2: i32) -> (i32, i32) {
    %c0_i32 = arith.constant 0 : i32
    %c0_i32_0 = arith.constant 0 : i32
    return %c0_i32, %arg2 : i32, i32
  }
  func.func @transform_5(%arg0: i32, %arg1: i32, %arg2: i32) -> (i32, i32) {
    %c0_i32 = arith.constant 0 : i32
    return %arg0, %arg1 : i32, i32
  }
}

</mosaic_0001>

<bundles_post_ra>
// kernel: vit_forward.13
= control target key start
LH: loop header
LB: loop body
LE: loop exit
PB: predicated region body
PF: predicated region fallthrough
CT: control target
= control target key end

     0   :  { %s559_s12 = smov 0   ;;  %s561_s13 = smov 0   ;;  %s604_s0 = inlined_call_operand.vmem [shape: f32[32,48], index: 0, kind: input, shape index: {}]   ;;  %s605_s1 = inlined_call_operand.vmem [shape: bf16[48,128], index: 1, kind: input, shape index: {}]   ;;  %s606_s2 = inlined_call_operand.vmem [shape: f32[1,128], index: 2, kind: input, shape index: {}]   ;;  %s607_s3 = inlined_call_operand.vmem [shape: f32[32,128], index: 3, kind: output, shape index: {}]  }
   0x1   :  { %s563_s14 = smov 0  }
   0x2 LB: > { %s32_s15 = sadd.s32 1, %s531_s13  ;;  %p458_p0 = scmp.ge.s32.totalorder %s535_s14, 1  ;;  %s535_s14 = sphi %s563_s14, %s13_s14   ;;  %s531_s13 = sphi %s561_s13, %s609_s13   ;;  %s527_s12 = sphi %s559_s12, %s608_s12  }
   0x3   : > { %p34_p1 = scmp.ge.s32.totalorder %s32_s15, 2  ;;  %p188_p2 = scmp.lt.s32.totalorder %s535_s14, 3 }
   0x5   : > { %s611_s15 = smov (%p34_p1, %s32_s15), 0  ;;  %p189_p3 = pnand %p458_p0, %p188_p2 }
   0x6   : > { %v510_v0 = vld [vmem:[%s605_s1] sm:$0xff] (!%p189_p3)   ;;  %v537_v1 = vmov (!%p189_p3), 0.0   ;;  %v511_v2 = vld [vmem:[%s605_s1 + $0x8] sm:$0xff] (!%p189_p3)   ;;  %vm538_vm0 = vmmov (!%p189_p3), 0   ;;  %s459_s20 = sshll.u32 (!%p189_p3), %s527_s12, 1  ;;  %v512_v3 = vld [vmem:[%s605_s1 + $0x10] sm:$0xff] (!%p189_p3)  }
   0x7   : > { %192 = sbr.rel (%p189_p3) target bundleno = 237 (0xed), region = 32  ;;  %474 = vmatprep.subr.bf16.mxu0 (!%p189_p3), %v537_v1  ;;  %480 = vmatprep.mubr.msk.bf16.mxu0 (!%p189_p3), %vm538_vm0, %v537_v1  ;;  %p230_p4 = scmp.lt.s32.totalorder (!%p189_p3), %s459_s20, 3  ;;  %vm294_vm1 = vcmask (!%p189_p3), 392192   ;;  %v463_v7 = vld [vmem:[%s606_s2] ss:$0 sm:$0xff] (!%p189_p3) }
   0x8   : > { %475 = vmatpush3.bf16.msra.mxu0 (!%p189_p3), %v510_v0 }
   0x9   : > { %476 = vmatprep.subr.bf16.mxu0 (!%p189_p3), %v537_v1 }
   0xc   : > { %477 = vmatpush3.bf16.msra.mxu0 (!%p189_p3), %v511_v2 }
   0xd   : > { %478 = vmatprep.subr.bf16.mxu0 (!%p189_p3), %v537_v1 }
   0xe   : > { %s613_s20 = smov (!%p230_p4, %s459_s20), 3 }
   0xf   : > { %s460_s23 = sshll.u32 %s613_s20, 3 }
  0x10   : > { %s236_s26 = scalar_lea.vmem %s604_s0, %s460_s23  ;;  %479 = vmatpush3.bf16.msra.mxu0 %v512_v3  ;;  %s257_s4 = scalar_lea.vmem %s607_s3, %s460_s23 }
  0x11   : > { %v260_v4 = vld [vmem:[%s236_s26] sm:$0xff]  ;;  %v261_v5 = vld [vmem:[%s236_s26 + $0x8] sm:$0xff] }
  0x12   : > { %v262_v6 = vpack.c.bf16 %v261_v5, %v260_v4 }
  0x14   : > { %481 = vmatmul.mubr.msk.bf16.vlgmr.msra.gmra.mrb[0].mxu0 %vm294_vm1, %v262_v6 }
  0xe7   : > { %v332_v8 = vpop.f32.mrb[0].mxu0 }
  0xe8   : > { %v333_v9 = vadd.f32 %v463_v7, %v332_v8  ;;  %v482_v10 = vpop.f32.mrb[1].mxu0 }
  0xe9   : > { %v335_v11 = vpop.f32.mrb[2].mxu0 }
  0xea   : > { %339 = vst [vmem:[%s257_s4] sm:$0xff] %v333_v9  ;;  %v336_v12 = vadd.f32 %v463_v7, %v335_v11  ;;  %v483_v13 = vpop.f32.mrb[3].mxu0 }
  0xec   : > { %340 = vst [vmem:[%s257_s4 + $0x8] sm:$0xff] %v336_v12 }
  0xed PF: > { %s13_s14 = sadd.s32 1, %s535_s14   ;;  %s608_s12 = smov %s531_s13 }
  0xee   : > { %p10_p5 = scmp.ge.s32.totalorder %s13_s14, 4   ;;  %s609_s13 = smov %s611_s15 }
  0xf0   :  { %12 = sbr.rel (!%p10_p5) target bundleno = 2 (0x2), region = 68 }

// kernel: vit_forward.14
= control target key start
LH: loop header
LB: loop body
LE: loop exit
PB: predicated region body
PF: predicated region fallthrough
CT: control target
= control target key end

     0   :  { %s289_s12 = smov 0   ;;  %s318_s0 = inlined_call_operand.vmem [shape: f32[2,16,128], index: 0, kind: input, shape index: {}]   ;;  %s319_s1 = inlined_call_operand.vmem [shape: f32[1,1,128], index: 1, kind: input, shape index: {}]   ;;  %s320_s2 = inlined_call_operand.vmem [shape: f32[1,17,128], index: 2, kind: input, shape index: {}]   ;;  %s321_s3 = inlined_call_operand.vmem [shape: f32[2,24,128], index: 3, kind: output, shape index: {}]  }
   0x1 LB: > { %s239_s13 = sadd.s32 4294967295, %s266_s12   ;;  %p243_p0 = scmp.ge.s32.totalorder %s266_s12, 1  ;;  %s266_s12 = sphi %s289_s12, %s13_s12  }
   0x2   : > { %p137_p1 = scmp.lt.s32.totalorder %s266_s12, 3 }
   0x4   : > { %p138_p2 = pnand %p243_p0, %p137_p1 }
   0x5   : > { %p161_p3 = scmp.lt.s32.totalorder (!%p138_p2), %s239_s13, 1  ;;  %v171_v0 = vld [vmem:[%s319_s1] sm:$0x1] (!%p138_p2)  ;;  %v177_v3 = vld [vmem:[%s320_s2 + $0x1] sm:$0xff] (!%p138_p2)  ;;  %v178_v4 = vld [vmem:[%s320_s2 + $0x9] sm:$0xff] (!%p138_p2)  ;;  %v268_v9 = vmov (!%p138_p2), 0.0  }
   0x6   : > { %141 = sbr.rel (%p138_p2) target bundleno = 20 (0x14), region = 32  ;;  %v172_v1 = vld [vmem:[%s320_s2] sm:$0x1] (!%p138_p2) }
   0x7   : > { %v173_v2 = vadd.f32 (!%p138_p2), %v172_v1, %v171_v0 }
   0xd   : > { %s323_s13 = smov (!%p161_p3, %s239_s13), 1 }
   0xe   : > { %s250_s18 = smul.u32 24, %s323_s13  ;;  %s249_s19 = sshll.u32 %s323_s13, 4 }
   0xf   : > { %s165_s26 = scalar_lea.vmem %s318_s0, %s249_s19 }
  0x10   : > { %s170_s29 = scalar_lea.vmem %s321_s3, %s250_s18  ;;  %v175_v5 = vld [vmem:[%s165_s26] sm:$0xff]  ;;  %v176_v6 = vld [vmem:[%s165_s26 + $0x8] sm:$0xff] }
  0x11   : > { %174 = vst [vmem:[%s170_s29] sm:$0x1] %v173_v2  ;;  %v179_v7 = vadd.f32 %v177_v3, %v175_v5  ;;  %v180_v8 = vadd.f32 %v178_v4, %v176_v6  ;;  %183 = vst [vmem:[%s170_s29 + $0x11] sm:$0x7f] %v268_v9 }
  0x13   : > { %181 = vst [vmem:[%s170_s29 + $0x1] sm:$0xff] %v179_v7  ;;  %182 = vst [vmem:[%s170_s29 + $0x9] sm:$0xff] %v180_v8 }
  0x14 PF: > { %s13_s12 = sadd.s32 1, %s266_s12  }
  0x15   : > { %p10_p4 = scmp.ge.s32.totalorder %s13_s12, 4  }
  0x17   :  { %12 = sbr.rel (!%p10_p4) target bundleno = 1 (0x1), region = 62 }

// kernel: vit_forward.17
= control target key start
LH: loop header
LB: loop body
LE: loop exit
PB: predicated region body
PF: predicated region fallthrough
CT: control target
= control target key end

     0   :  { %s711_s15 = smov 0   ;;  %s713_s16 = smov 0   ;;  %s779_s0 = inlined_call_operand.vmem [shape: f32[48,128], index: 0, kind: input, shape index: {}]   ;;  %s780_s1 = inlined_call_operand.vmem [shape: bf16[128,128], index: 1, kind: input, shape index: {}]   ;;  %s781_s2 = inlined_call_operand.vmem [shape: f32[1,128], index: 2, kind: input, shape index: {}]   ;;  %s782_s3 = inlined_call_operand.vmem [shape: f32[48,128], index: 3, kind: input, shape index: {}]   ;;  %s783_s4 = inlined_call_operand.vmem [shape: f32[48,128], index: 4, kind: output, shape index: {}]  }
   0x1   :  { %s715_s17 = smov 0  }
   0x2 LB: > { %s33_s18 = sadd.s32 1, %s680_s16  ;;  %p585_p0 = scmp.ge.s32.totalorder %s684_s17, 1  ;;  %s684_s17 = sphi %s715_s17, %s14_s17   ;;  %s680_s16 = sphi %s713_s16, %s785_s16   ;;  %s676_s15 = sphi %s711_s15, %s784_s15  }
   0x3   : > { %p35_p1 = scmp.ge.s32.totalorder %s33_s18, 2  ;;  %p229_p2 = scmp.lt.s32.totalorder %s684_s17, 3 }
   0x5   : > { %s787_s18 = smov (%p35_p1, %s33_s18), 0  ;;  %p230_p3 = pnand %p585_p0, %p229_p2 }
   0x6   : > { %v654_v0 = vld [vmem:[%s780_s1] sm:$0xff] (!%p230_p3)   ;;  %s280_s21 = smul.u32 (!%p230_p3), 3, %s676_s15  ;;  %v655_v1 = vld [vmem:[%s780_s1 + $0x8] sm:$0xff] (!%p230_p3)   ;;  %v656_v2 = vld [vmem:[%s780_s1 + $0x10] sm:$0xff] (!%p230_p3)  }
   0x7   : > { %233 = sbr.rel (%p230_p3) target bundleno = 259 (0x103), region = 36  ;;  %610 = vmatprep.subr.bf16.mxu0 (!%p230_p3), %v654_v0  ;;  %v657_v3 = vld [vmem:[%s780_s1 + $0x18] sm:$0xff] (!%p230_p3)   ;;  %v658_v7 = vld [vmem:[%s780_s1 + $0x20] sm:$0xff] (!%p230_p3)   ;;  %v659_v8 = vld [vmem:[%s780_s1 + $0x28] sm:$0xff] (!%p230_p3)  }
   0x8   : > { %p281_p4 = scmp.lt.s32.totalorder (!%p230_p3), %s280_s21, 5  ;;  %611 = vmatpush3.bf16.msra.mxu0 (!%p230_p3), %v654_v0  ;;  %v660_v9 = vld [vmem:[%s780_s1 + $0x30] sm:$0xff] (!%p230_p3)   ;;  %v661_v10 = vld [vmem:[%s780_s1 + $0x38] sm:$0xff] (!%p230_p3)   ;;  %v589_v13 = vld [vmem:[%s781_s2] ss:$0 sm:$0xff] (!%p230_p3) }
   0x9   : > { %612 = vmatprep.subr.bf16.mxu0 (!%p230_p3), %v655_v1 }
   0xc   : > { %613 = vmatpush3.bf16.msra.mxu0 (!%p230_p3), %v655_v1 }
   0xd   : > { %614 = vmatprep.subr.bf16.mxu0 (!%p230_p3), %v656_v2 }
   0xe   : > { %s789_s21 = smov (!%p281_p4, %s280_s21), 5 }
   0xf   : > { %s738_s26 = sshll.u32 %s789_s21, 3 }
  0x10   : > { %s287_s29 = scalar_lea.vmem %s779_s0, %s738_s26  ;;  %615 = vmatpush3.bf16.msra.mxu0 %v656_v2  ;;  %s308_s19 = scalar_lea.vmem %s782_s3, %s738_s26 }
  0x11   : > { %v320_v4 = vld [vmem:[%s287_s29] sm:$0xff]  ;;  %v321_v5 = vld [vmem:[%s287_s29 + $0x8] sm:$0xff]  ;;  %616 = vmatprep.subr.bf16.mxu0 %v657_v3  ;;  %v322_v11 = vld [vmem:[%s287_s29 + $0x10] sm:$0xff]  ;;  %s317_s24 = scalar_lea.vmem %s783_s4, %s738_s26 }
  0x12   : > { %v323_v6 = vpack.c.bf16 %v321_v5, %v320_v4  ;;  %v324_v12 = vpack.c.bf16 %v322_v11, %v322_v11  ;;  %v444_v16 = vld [vmem:[%s308_s19] sm:$0xff]  ;;  %v445_v21 = vld [vmem:[%s308_s19 + $0x8] sm:$0xff]  ;;  %v446_v22 = vld [vmem:[%s308_s19 + $0x10] sm:$0xff] }
  0x14   : > { %626 = vmatprep.mubr.bf16.mxu0 %v323_v6  ;;  %617 = vmatpush3.bf16.msra.mxu0 %v657_v3 }
  0x15   : > { %618 = vmatprep.subr.bf16.mxu0 %v658_v7 }
  0x18   : > { %619 = vmatpush3.bf16.msra.mxu0 %v658_v7 }
  0x19   : > { %620 = vmatprep.subr.bf16.mxu0 %v659_v8 }
  0x1c   : > { %621 = vmatpush3.bf16.msra.mxu0 %v659_v8 }
  0x1d   : > { %622 = vmatprep.subr.bf16.mxu0 %v660_v9 }
  0x20   : > { %623 = vmatpush3.bf16.msra.mxu0 %v660_v9 }
  0x21   : > { %624 = vmatprep.subr.bf16.mxu0 %v661_v10 }
  0x24   : > { %625 = vmatpush3.bf16.msra.mxu0 %v661_v10 }
  0x27   : > { %627 = vmatmul.mubr.bf16.vlgmr.msra.gmra.mrb[0].mxu0 %v324_v12 }
  0xfa   : > { %v628_v14 = vpop.f32.mrb[0].mxu0 }
  0xfb   : > { %v430_v15 = vpop.f32.mrb[1].mxu0  ;;  %v439_v19 = vadd.f32 %v628_v14, %v589_v13 }
  0xfc   : > { %v431_v17 = vadd.f32 %v589_v13, %v430_v15  ;;  %v629_v18 = vpop.f32.mrb[2].mxu0 }
  0xfd   : > { %v433_v20 = vpop.f32.mrb[3].mxu0  ;;  %v449_v26 = vadd.f32 %v446_v22, %v439_v19 }
  0xfe   : > { %v447_v23 = vadd.f32 %v444_v16, %v431_v17  ;;  %v434_v24 = vadd.f32 %v589_v13, %v433_v20 }
  0xff   : > { %452 = vst [vmem:[%s317_s24 + $0x10] sm:$0xff] %v449_v26 }
 0x100   : > { %450 = vst [vmem:[%s317_s24] sm:$0xff] %v447_v23  ;;  %v448_v25 = vadd.f32 %v445_v21, %v434_v24 }
 0x102   : > { %451 = vst [vmem:[%s317_s24 + $0x8] sm:$0xff] %v448_v25 }
 0x103 PF: > { %s14_s17 = sadd.s32 1, %s684_s17   ;;  %s784_s15 = smov %s680_s16 }
 0x104   : > { %p11_p5 = scmp.ge.s32.totalorder %s14_s17, 4   ;;  %s785_s16 = smov %s787_s18 }
 0x106   :  { %13 = sbr.rel (!%p11_p5) target bundleno = 2 (0x2), region = 75 }

// kernel: vit_forward.15
= control target key start
LH: loop header
LB: loop body
LE: loop exit
PB: predicated region body
PF: predicated region fallthrough
CT: control target
= control target key end

     0   :  { %s1085_s18 = smov 0   ;;  %s1087_s19 = smov 0   ;;  %s1218_s0 = inlined_call_operand.vmem [shape: f32[48,128], index: 0, kind: input, shape index: {}]   ;;  %s1219_s1 = inlined_call_operand.vmem [shape: bf16[128,384], index: 1, kind: input, shape index: {}]   ;;  %s1220_s2 = inlined_call_operand.vmem [shape: f32[1,384], index: 2, kind: input, shape index: {}]   ;;  %s1221_s3 = inlined_call_operand.vmem [shape: f32[1,128], index: 3, kind: input, shape index: {}]   ;;  %s1222_s4 = inlined_call_operand.vmem [shape: f32[1,128], index: 4, kind: input, shape index: {}]   ;;  %s1223_s5 = inlined_call_operand.vmem [shape: f32[48,384], index: 5, kind: output, shape index: {}]  }
   0x1   :  { %s1089_s20 = smov 0  }
   0x2 LB: > { %s34_s21 = sadd.s32 1, %s1048_s19  ;;  %p890_p0 = scmp.ge.s32.totalorder %s1052_s20, 1  ;;  %s1052_s20 = sphi %s1089_s20, %s15_s20   ;;  %s1048_s19 = sphi %s1087_s19, %s1225_s19   ;;  %s1044_s18 = sphi %s1085_s18, %s1224_s18  }
   0x3   : > { %p36_p1 = scmp.ge.s32.totalorder %s34_s21, 2  ;;  %p259_p2 = scmp.lt.s32.totalorder %s1052_s20, 3 }
   0x5   : > { %s1227_s21 = smov (%p36_p1, %s34_s21), 0  ;;  %p260_p3 = pnand %p890_p0, %p259_p2 }
   0x6   : > { %s315_s22 = smul.u32 (!%p260_p3), 3, %s1044_s18  ;;  %v990_v15 = vld [vmem:[%s1219_s1 + $0x4] ss:$12 sps:$4 sm:$0xff] (!%p260_p3)   ;;  %v992_v16 = vld [vmem:[%s1219_s1] ss:$12 sps:$4 sm:$0xff] (!%p260_p3)   ;;  %v1054_v39 = vmov (!%p260_p3), 0  }
   0x7   : > { %263 = sbr.rel (%p260_p3) target bundleno = 568 (0x238), region = 40  ;;  %v993_v17 = vld [vmem:[%s1219_s1 + $0x8] ss:$12 sps:$4 sm:$0xff] (!%p260_p3)   ;;  %627 = vmatprep.subr.bf16.mxu0 (!%p260_p3), %v990_v15  ;;  %v996_v19 = vld [vmem:[%s1219_s1 + $0x18] ss:$12 sps:$4 sm:$0xff] (!%p260_p3)   ;;  %659 = vmatprep.mubr.bf16.mxu0 (!%p260_p3), %v1054_v39 }
   0x8   : > { %p316_p4 = scmp.lt.s32.totalorder (!%p260_p3), %s315_s22, 5  ;;  %628 = vmatpush1.bf16.msra.mxu0 (!%p260_p3), %v992_v16  ;;  %944 = vmatprep.subr.bf16.mxu1 (!%p260_p3), %v993_v17  ;;  %v994_v18 = vld [vmem:[%s1219_s1 + $0x1c] ss:$12 sps:$4 sm:$0xff] (!%p260_p3)   ;;  %v997_v20 = vld [vmem:[%s1219_s1 + $0x20] ss:$12 sps:$4 sm:$0xff] (!%p260_p3)  }
   0x9   : > { %945 = vmatpush3.bf16.msra.mxu1 (!%p260_p3), %v993_v17  ;;  %629 = vmatprep.subr.bf16.mxu0 (!%p260_p3), %v994_v18  ;;  %v998_v21 = vld [vmem:[%s1219_s1 + $0x34] ss:$12 sps:$4 sm:$0xff] (!%p260_p3)   ;;  %v1000_v22 = vld [vmem:[%s1219_s1 + $0x30] ss:$12 sps:$4 sm:$0xff] (!%p260_p3)   ;;  %v1001_v23 = vld [vmem:[%s1219_s1 + $0x38] ss:$12 sps:$4 sm:$0xff] (!%p260_p3)  }
   0xa   : > { %946 = vmatprep.subr.bf16.mxu1 (!%p260_p3), %v997_v20  ;;  %v1002_v24 = vld [vmem:[%s1219_s1 + $0x4c] ss:$12 sps:$4 sm:$0xff] (!%p260_p3)   ;;  %v1004_v25 = vld [vmem:[%s1219_s1 + $0x48] ss:$12 sps:$4 sm:$0xff] (!%p260_p3)   ;;  %v1005_v26 = vld [vmem:[%s1219_s1 + $0x50] ss:$12 sps:$4 sm:$0xff] (!%p260_p3)  }
   0xb   : > { %v1006_v27 = vld [vmem:[%s1219_s1 + $0x64] ss:$12 sps:$4 sm:$0xff] (!%p260_p3)   ;;  %v1008_v28 = vld [vmem:[%s1219_s1 + $0x60] ss:$12 sps:$4 sm:$0xff] (!%p260_p3)   ;;  %v1009_v29 = vld [vmem:[%s1219_s1 + $0x68] ss:$12 sps:$4 sm:$0xff] (!%p260_p3)  }
   0xc   : > { %630 = vmatpush1.bf16.msra.mxu0 (!%p260_p3), %v996_v19  ;;  %v1010_v30 = vld [vmem:[%s1219_s1 + $0x7c] ss:$12 sps:$4 sm:$0xff] (!%p260_p3)   ;;  %v1012_v31 = vld [vmem:[%s1219_s1 + $0x78] ss:$12 sps:$4 sm:$0xff] (!%p260_p3)   ;;  %v1013_v32 = vld [vmem:[%s1219_s1 + $0x80] ss:$12 sps:$4 sm:$0xff] (!%p260_p3)  }
   0xd   : > { %947 = vmatpush3.bf16.msra.mxu1 (!%p260_p3), %v997_v20  ;;  %631 = vmatprep.subr.bf16.mxu0 (!%p260_p3), %v998_v21  ;;  %v1014_v33 = vld [vmem:[%s1219_s1 + $0x94] ss:$12 sps:$4 sm:$0xff] (!%p260_p3)   ;;  %v1016_v34 = vld [vmem:[%s1219_s1 + $0x90] ss:$12 sps:$4 sm:$0xff] (!%p260_p3)   ;;  %v1017_v35 = vld [vmem:[%s1219_s1 + $0x98] ss:$12 sps:$4 sm:$0xff] (!%p260_p3)  }
   0xe   : > { %s1229_s22 = smov (!%p316_p4, %s315_s22), 5  ;;  %948 = vmatprep.subr.bf16.mxu1 %v1001_v23  ;;  %v1018_v36 = vld [vmem:[%s1219_s1 + $0xac] ss:$12 sps:$4 sm:$0xff]   ;;  %v1021_v37 = vld [vmem:[%s1219_s1 + $0xb0] ss:$12 sps:$4 sm:$0xff]  }
   0xf   : > { %s891_s23 = sshll.u32 %s1229_s22, 3  ;;  %v1020_v38 = vld [vmem:[%s1219_s1 + $0xa8] ss:$12 sps:$4 sm:$0xff]   ;;  %v893_v51 = vld [vmem:[%s1221_s3] ss:$0 sm:$0xff]  ;;  %s964_s14 = smul.u32 24, %s1229_s22 }
  0x10   : > { %s322_s26 = scalar_lea.vmem %s1218_s0, %s891_s23  ;;  %632 = vmatpush1.bf16.msra.mxu0 %v1000_v22  ;;  %v894_v57 = vld [vmem:[%s1222_s4] ss:$0 sm:$0xff] }
  0x11   : > { %v364_v0 = vld [vmem:[%s322_s26] sm:$0xff]  ;;  %v366_v1 = vld [vmem:[%s322_s26 + $0x10] sm:$0xff]  ;;  %v365_v2 = vld [vmem:[%s322_s26 + $0x8] sm:$0xff]  ;;  %949 = vmatpush3.bf16.msra.mxu1 %v1001_v23  ;;  %633 = vmatprep.subr.bf16.mxu0 %v1002_v24  ;;  %s356_s17 = scalar_lea.vmem %s1223_s5, %s964_s14 }
  0x12   : > { %367 = vadd.xlane.f32.xlu0 %v364_v0  ;;  %371 = vadd.xlane.f32.xlu1 %v366_v1 }
  0x13   : > { %950 = vmatprep.subr.bf16.mxu1 %v1005_v26 }
  0x14   : > { %634 = vmatpush1.bf16.msra.mxu0 %v1004_v25 }
  0x15   : > { %951 = vmatpush3.bf16.msra.mxu1 %v1005_v26  ;;  %635 = vmatprep.subr.bf16.mxu0 %v1006_v27 }
  0x16   : > { %369 = vadd.xlane.f32.xlu0 %v365_v2  ;;  %952 = vmatprep.subr.bf16.mxu1 %v1009_v29 }
  0x18   : > { %636 = vmatpush1.bf16.msra.mxu0 %v1008_v28 }
  0x19   : > { %953 = vmatpush3.bf16.msra.mxu1 %v1009_v29  ;;  %637 = vmatprep.subr.bf16.mxu0 %v1010_v30 }
  0x1a   : > { %954 = vmatprep.subr.bf16.mxu1 %v1013_v32 }
  0x1c   : > { %638 = vmatpush1.bf16.msra.mxu0 %v1012_v31 }
  0x1d   : > { %955 = vmatpush3.bf16.msra.mxu1 %v1013_v32  ;;  %639 = vmatprep.subr.bf16.mxu0 %v1014_v33 }
  0x1e   : > { %956 = vmatprep.subr.bf16.mxu1 %v1017_v35 }
  0x20   : > { %640 = vmatpush1.bf16.msra.mxu0 %v1016_v34 }
  0x21   : > { %957 = vmatpush3.bf16.msra.mxu1 %v1017_v35  ;;  %641 = vmatprep.subr.bf16.mxu0 %v1018_v36 }
  0x22   : > { %958 = vmatprep.subr.bf16.mxu1 %v1021_v37 }
  0x24   : > { %642 = vmatpush1.bf16.msra.mxu0 %v1020_v38 }
  0x25   : > { %959 = vmatpush3.bf16.msra.mxu1 %v1021_v37 }
  0x9f   : > { %v368_v3 = vpop.xlane.xlu0 %367  ;;  %v372_v4 = vpop.xlane.xlu1 %371 }
  0xa0   : > { %v374_v5 = vmul.f32 0.0078125, %v368_v3  ;;  %v376_v6 = vmul.f32 0.0078125, %v372_v4  ;;  %v474_v3 = vlaneseq }
  0xa2   : > { %v1109_v7 = vsub.f32 %v364_v0, %v374_v5  ;;  %v1111_v8 = vsub.f32 %v366_v1, %v376_v6  ;;  %v475_v4 = vshrl.u32 %v474_v3, 7  ;;  %v472_v6 = vld [vmem:[%s1220_s2] sm:$0x7] }
  0xa3   : > { %v370_v9 = vpop.xlane.xlu0 %369 }
  0xa4   : > { %v375_v10 = vmul.f32 0.0078125, %v370_v9  ;;  %v380_v11 = vmul.f32 %v1109_v7, %v1109_v7  ;;  %v382_v13 = vmul.f32 %v1111_v8, %v1111_v8  ;;  %v476_v5 = vsub.s32 0, %v475_v4 }
  0xa6   : > { %v1115_v12 = vsub.f32 %v365_v2, %v375_v10  ;;  %383 = vadd.xlane.f32.xlu1 %v380_v11  ;;  %v477_v9 = vrot.slane %v472_v6, %v476_v5 }
  0xa8   : > { %v381_v14 = vmul.f32 %v1115_v12, %v1115_v12 }
  0xaa   : > { %387 = vadd.xlane.f32.xlu1 %v382_v13  ;;  %385 = vadd.xlane.f32.xlu0 %v381_v14 }
 0x133   : > { %v384_v40 = vpop.xlane.xlu1 %383 }
 0x134   : > { %v389_v41 = vmul.f32 0.0078125, %v384_v40 }
 0x136   : > { %v392_v42 = vadd.f32 1e-05, %v389_v41 }
 0x137   : > { %v388_v43 = vpop.xlane.xlu1 %387  ;;  %v386_v44 = vpop.xlane.xlu0 %385 }
 0x138   : > { %1024 = vrsqrt.f32 %v392_v42  ;;  %v391_v45 = vmul.f32 0.0078125, %v388_v43  ;;  %v390_v46 = vmul.f32 0.0078125, %v386_v44 }
 0x13a   : > { %v394_v47 = vadd.f32 1e-05, %v391_v45  ;;  %v393_v48 = vadd.f32 1e-05, %v390_v46 }
 0x13c   : > { %1026 = vrsqrt.f32 %v394_v47 }
 0x13d   : > { %1028 = vrsqrt.f32 %v393_v48 }
 0x142   : > { %v1025_v49 = vpop.eup %1024 }
 0x143   : > { %v398_v50 = vmul.f32 %v1025_v49, %v1109_v7  ;;  %v480_v7 = vsub.s32 1, %v475_v4 }
 0x145   : > { %v408_v55 = vmul.f32 %v893_v51, %v398_v50  ;;  %v481_v10 = vrot.slane %v472_v6, %v480_v7 }
 0x146   : > { %v1027_v52 = vpop.eup %1026 }
 0x147   : > { %v1029_v53 = vpop.eup %1028  ;;  %v400_v54 = vmul.f32 %v1027_v52, %v1111_v8  ;;  %v418_v61 = vadd.f32 %v894_v57, %v408_v55  ;;  %v484_v8 = vsub.s32 2, %v475_v4 }
 0x148   : > { %v399_v56 = vmul.f32 %v1029_v53, %v1115_v12 }
 0x149   : > { %v410_v58 = vmul.f32 %v893_v51, %v400_v54  ;;  %v485_v11 = vrot.slane %v472_v6, %v484_v8 }
 0x14a   : > { %v409_v59 = vmul.f32 %v893_v51, %v399_v56 }
 0x14b   : > { %v420_v60 = vadd.f32 %v894_v57, %v410_v58 }
 0x14c   : > { %v419_v62 = vadd.f32 %v894_v57, %v409_v59 }
 0x14d   : > { %v928_v63 = vpack.c.bf16 %v420_v60, %v420_v60 }
 0x14e   : > { %v932_v0 = vpack.c.bf16 %v419_v62, %v418_v61 }
 0x14f   : > { %436 = vst [vmem:[#allocation2 + $0x8] sm:$0xf] %v928_v63 }
 0x150   : > { %933 = vst [vmem:[#allocation2] sm:$0xff] %v932_v0  }
 0x156   : > { %v1023_v1 = vld [vmem:[#allocation2 + $0x8] ss:$0 sps:$4 sm:$0xff]  }
 0x157   : > { %v1022_v2 = vld [vmem:[#allocation2] sm:$0xff]  }
 0x158   : > { %660 = vmatmul.mubr.bf16.vlgmr.msra.gmra.mrb[0].mxu0 %v1022_v2  ;;  %960 = vmatprep.mubr.bf16.mxu1 %v1022_v2 }
 0x159   : > { %961 = vmatmul.mubr.bf16.vlgmr.msra.gmra.mrb[0].mxu1 %v1023_v1  ;;  %669 = vmatprep.mubr.bf16.mxu0 %v1054_v39 }
 0x160   : > { %670 = vmatmul.mubr.bf16.gmra.mrb[4].mxu0 %v1023_v1 }
 0x22b   : > { %v661_v12 = vpop.f32.mrb[0].mxu0 }
 0x22c   : > { %v662_v13 = vadd.f32 %v661_v12, %v477_v9  ;;  %v663_v14 = vpop.f32.mrb[1].mxu0  ;;  %v962_v15 = vpop.f32.mrb[0].mxu1 }
 0x22d   : > { %v664_v16 = vadd.f32 %v663_v14, %v481_v10  ;;  %v665_v17 = vpop.f32.mrb[2].mxu0  ;;  %v712_v18 = vpop.f32.mrb[1].mxu1  ;;  %v721_v26 = vadd.f32 %v962_v15, %v485_v11 }
 0x22e   : > { %726 = vst [vmem:[%s356_s17] sm:$0xff] %v662_v13  ;;  %v666_v19 = vadd.f32 %v665_v17, %v477_v9  ;;  %v713_v20 = vadd.f32 %v712_v18, %v485_v11  ;;  %v667_v21 = vpop.f32.mrb[3].mxu0  ;;  %v963_v22 = vpop.f32.mrb[2].mxu1 }
 0x22f   : > { %727 = vst [vmem:[%s356_s17 + $0x8] sm:$0xff] %v664_v16  ;;  %v668_v23 = vadd.f32 %v667_v21, %v481_v10  ;;  %v715_v24 = vpop.f32.mrb[3].mxu1  ;;  %734 = vst [vmem:[%s356_s17 + $0x40] sm:$0xff] %v721_v26 }
 0x230   : > { %729 = vst [vmem:[%s356_s17 + $0x18] sm:$0xff] %v666_v19  ;;  %728 = vst [vmem:[%s356_s17 + $0x10] sm:$0xff] %v713_v20  ;;  %v716_v25 = vadd.f32 %v715_v24, %v485_v11 }
 0x231   : > { %730 = vst [vmem:[%s356_s17 + $0x20] sm:$0xff] %v668_v23 }
 0x232   : > { %731 = vst [vmem:[%s356_s17 + $0x28] sm:$0xff] %v716_v25 }
 0x233   : > { %v671_v27 = vpop.f32.mrb[4].mxu0 }
 0x234   : > { %v672_v28 = vadd.f32 %v671_v27, %v477_v9  ;;  %v673_v29 = vpop.f32.mrb[5].mxu0 }
 0x235   : > { %v674_v30 = vadd.f32 %v673_v29, %v481_v10  ;;  %v675_v31 = vpop.f32.mrb[6].mxu0 }
 0x236   : > { %732 = vst [vmem:[%s356_s17 + $0x30] sm:$0xff] %v672_v28  ;;  %v676_v32 = vpop.f32.mrb[7].mxu0 }
 0x237   : > { %733 = vst [vmem:[%s356_s17 + $0x38] sm:$0xff] %v674_v30 }
 0x238 PF: > { %s15_s20 = sadd.s32 1, %s1052_s20   ;;  %s1224_s18 = smov %s1048_s19 }
 0x239   : > { %p12_p5 = scmp.ge.s32.totalorder %s15_s20, 4   ;;  %s1225_s19 = smov %s1227_s21 }
 0x23b   :  { %14 = sbr.rel (!%p12_p5) target bundleno = 2 (0x2), region = 86 }

// kernel: vit_forward.16
= control target key start
LH: loop header
LB: loop body
LE: loop exit
PB: predicated region body
PF: predicated region fallthrough
CT: control target
= control target key end

     0   :  { %s1137_s6 = smov 0   ;;  %s1397_s0 = inlined_call_operand.vmem [shape: f32[2,24,384], index: 0, kind: input, shape index: {}]   ;;  %s1398_s1 = inlined_call_operand.vmem [shape: f32[2,24,128], index: 1, kind: output, shape index: {}]  }
   0x1 LB: > { %s922_s7 = sadd.s32 4294967295, %s1122_s6   ;;  %p926_p0 = scmp.ge.s32.totalorder %s1122_s6, 1  ;;  %s1122_s6 = sphi %s1137_s6, %s11_s6  }
   0x2   : > { %p87_p1 = scmp.lt.s32.totalorder %s1122_s6, 3 }
   0x4   : > { %p88_p2 = pnand %p926_p0, %p87_p1 }
   0x5   : > { %p107_p3 = scmp.lt.s32.totalorder (!%p88_p2), %s922_s7, 1  ;;  %vm136_vm0 = vcmask (!%p88_p2), 261120   ;;  %v133_v12 = vlaneseq (!%p88_p2)  ;;  %vm203_vm2 = vcmask (!%p88_p2), 195584   ;;  %s1124_s12 = smov (!%p88_p2), 96   ;;  %vm242_vm3 = vcmask (!%p88_p2), 1043456  }
   0x6   : > { %91 = sbr.rel (%p88_p2) target bundleno = 1940 (0x794), region = 24  ;;  %s1125_s13 = smov (!%p88_p2), 64   ;;  %vm489_vm4 = vcmask (!%p88_p2), 523520   ;;  %vm676_vm5 = vcmask (!%p88_p2), 785920   ;;  %vm863_vm6 = vcmask (!%p88_p2), 1048320  }
   0x7   : > { %v1179_v13 = vand.u32 (!%p88_p2), 127, %v133_v12  ;;  %s1126_s14 = smov (!%p88_p2), 32  }
   0x9   : > { %vm135_vm1 = vcmp.lt.s32.totalorder (!%p88_p2), %v1179_v13, 17 }
   0xd   : > { %s1400_s7 = smov (!%p107_p3, %s922_s7), 1 }
   0xe   : > { %s1055_s8 = smul.u32 72, %s1400_s7 }
   0xf   : > { %s1056_s15 = smul.u32 24, %s1400_s7 }
  0x10   : > { %s1151_s11 = scalar_lea.vmem %s1397_s0, %s1055_s8 }
  0x11   : > { %v119_v0 = vld [vmem:[%s1151_s11 + $0x8] sm:$0xff]  ;;  %v122_v1 = vld [vmem:[%s1151_s11 + $0x20] sm:$0xff]  ;;  %v125_v2 = vld [vmem:[%s1151_s11 + $0x38] sm:$0xff]  ;;  %s1371_s18 = scalar_lea.vmem %s1398_s1, %s1056_s15 }
  0x12   : > { %v1156_v3 = vpack.c.bf16 %v122_v1, %v119_v0  ;;  %v1158_v4 = vpack.c.bf16 %v125_v2, %v125_v2  ;;  %v118_v5 = vld [vmem:[%s1151_s11] sm:$0xff]  ;;  %v121_v6 = vld [vmem:[%s1151_s11 + $0x18] sm:$0xff]  ;;  %v124_v10 = vld [vmem:[%s1151_s11 + $0x30] sm:$0xff] }
  0x13   : > { %v1162_v7 = vpack.c.bf16 %v121_v6, %v118_v5  ;;  %v1175_v11 = vpack.c.bf16 %v124_v10, %v124_v10  ;;  %v120_v27 = vld [vmem:[%s1151_s11 + $0x10] sm:$0xff]  ;;  %v123_v28 = vld [vmem:[%s1151_s11 + $0x28] sm:$0xff]  ;;  %v126_v30 = vld [vmem:[%s1151_s11 + $0x40] sm:$0xff] }
  0x14   : > { %1043 = vmatprep.subr.msk.bf16.mxu0 %vm136_vm0, %v1156_v3  ;;  %v144_v8 = vsel %vm136_vm0, %v1156_v3, 0  ;;  %v147_v9 = vsel %vm136_vm0, %v1158_v4, 0  ;;  %v1197_v29 = vpack.c.bf16 %v123_v28, %v120_v27  ;;  %v1202_v31 = vpack.c.bf16 %v126_v30, %v126_v30 }
  0x15   : > { %980 = vmatpush3.bf16.xpose.msra.mxu0 %v144_v8  ;;  %983 = vmatprep.mubr.msk.bf16.mxu0 %vm136_vm0, %v1162_v7 }
  0x16   : > { %1044 = vmatprep.subr.msk.bf16.mxu0 %vm136_vm0, %v1158_v4  ;;  %987 = vmatprep.subr.bf16.mxu1 %v1197_v29  ;;  %v244_v32 = vsel %vm242_vm3, %v1202_v31, 0 }
  0x17   : > { %988 = vmatpush3.bf16.msra.mxu1 %v1197_v29 }
  0x18   : > { %1045 = vmatprep.subr.msk.bf16.mxu1 %vm242_vm3, %v1202_v31 }
  0x1b   : > { %990 = vmatpush3.bf16.msra.mxu1 %v244_v32 }
  0x1d   : > { %982 = vmatpush3.bf16.xpose.msra.mxu0 %v147_v9 }
  0x24   : > { %984 = vmatmul.mubr.msk.bf16.vlgmr.msra.gmra.mrb[0].mxu0 %vm136_vm0, %v1175_v11 }
  0xf7   : > { %v985_v14 = vpop.f32.mrb[0].mxu0 }
  0xf8   : > { %v199_v15 = vmul.f32 0.17677669, %v985_v14  ;;  %v183_v16 = vpop.f32.mrb[1].mxu0 }
  0xf9   : > { %v197_v17 = vmul.f32 0.17677669, %v183_v16  ;;  %v986_v18 = vpop.f32.mrb[2].mxu0 }
  0xfa   : > { %v186_v19 = vpop.f32.mrb[3].mxu0  ;;  %v202_v20 = vsel %vm135_vm1, %v199_v15, -1e+30 }
  0xfb   : > { %v198_v21 = vmul.f32 0.17677669, %v186_v19  ;;  %v210_v22 = vsel %vm203_vm2, %v202_v20, -inf  ;;  %v200_v23 = vsel %vm135_vm1, %v197_v17, -1e+30 }
  0xfc   : > { %211 = vmax.xlane.f32.xlu1 %v210_v22  ;;  %v204_v24 = vsel %vm203_vm2, %v200_v23, -inf }
  0xfd   : > { %205 = vmax.xlane.f32.xlu0 %v204_v24  ;;  %v201_v25 = vsel %vm135_vm1, %v198_v21, -1e+30 }
  0xfe   : > { %v207_v26 = vsel %vm203_vm2, %v201_v25, -inf }
 0x101   : > { %208 = vmax.xlane.f32.xlu0 %v207_v26 }
 0x10d   : > { %308 = vrot.lane.b32.xlu1 %v1156_v3, %s1124_s12 }
 0x111   : > { %302 = vrot.lane.b32.xlu1 %v1162_v7, %s1124_s12 }
 0x115   : > { %304 = vrot.lane.b32.xlu1 %v1175_v11, %s1124_s12 }
 0x117   : > { %310 = vrot.lane.b32.xlu0 %v1158_v4, %s1124_s12 }
 0x189   : > { %v212_v33 = vpop.xlane.xlu1 %211 }
 0x18a   : > { %v215_v34 = vsub.f32 %v202_v20, %v212_v33  ;;  %v206_v35 = vpop.xlane.xlu0 %205 }
 0x18b   : > { %v213_v36 = vsub.f32 %v200_v23, %v206_v35 }
 0x18c   : > { %v220_v37 = vmul.f32 1.442695, %v215_v34 }
 0x18d   : > { %v309_v38 = vpop.permute.xlu1 %308  ;;  %v216_v39 = vmul.f32 1.442695, %v213_v36 }
 0x18e   : > { %v209_v40 = vpop.xlane.xlu0 %208  ;;  %1046 = vmatprep.subr.msk.bf16.mxu1 %vm136_vm0, %v309_v38  ;;  %1068 = vpow2.f32 %v220_v37  ;;  %v319_v47 = vsel %vm136_vm0, %v309_v38, 0 }
 0x18f   : > { %v214_v41 = vsub.f32 %v201_v25, %v209_v40  ;;  %1070 = vpow2.f32 %v216_v39 }
 0x191   : > { %v218_v42 = vmul.f32 1.442695, %v214_v41  ;;  %v303_v49 = vpop.permute.xlu1 %302 }
 0x192   : > { %v311_v50 = vpop.permute.xlu0 %310 }
 0x193   : > { %1072 = vpow2.f32 %v218_v42  ;;  %v322_v51 = vsel %vm136_vm0, %v311_v50, 0 }
 0x195   : > { %v305_v52 = vpop.permute.xlu1 %304 }
 0x198   : > { %v1213_v43 = vpop.eup %1068 }
 0x199   : > { %v1215_v44 = vpop.eup %1070  ;;  %v235_v48 = vpack.c.bf16 %v1213_v43, %v1213_v43 }
 0x19d   : > { %v1217_v45 = vpop.eup %1072 }
 0x19e   : > { %v234_v46 = vpack.c.bf16 %v1217_v45, %v1215_v44 }
 0x1a0   : > { %991 = vmatprep.mubr.msk.bf16.mxu1 %vm203_vm2, %v234_v46 }
 0x1a1   : > { %992 = vmatmul.mubr.msk.bf16.vlgmr.msra.gmra.mrb[0].mxu1 %vm203_vm2, %v235_v48 }
 0x1a2   : > { %996 = vmatpush3.bf16.xpose.msra.mxu1 %v319_v47  ;;  %999 = vmatprep.mubr.msk.bf16.mxu1 %vm136_vm0, %v303_v49 }
 0x1a3   : > { %1047 = vmatprep.subr.msk.bf16.mxu1 %vm136_vm0, %v311_v50 }
 0x1aa   : > { %998 = vmatpush3.bf16.xpose.msra.mxu1 %v322_v51 }
 0x1b1   : > { %1000 = vmatmul.mubr.msk.bf16.vlgmr.msra.gmra.mrb[4].mxu1 %vm136_vm0, %v305_v52 }
 0x274   : > { %v1230_v53 = vpop.f32.mrb[0].mxu1 }
 0x275   : > { %v1232_v54 = vpop.f32.mrb[1].mxu1 }
 0x276   : > { %v994_v55 = vpop.f32.mrb[2].mxu1 }
 0x277   : > { %v1234_v56 = vpop.f32.mrb[3].mxu1 }
 0x284   : > { %v1001_v57 = vpop.f32.mrb[4].mxu1 }
 0x285   : > { %v374_v58 = vmul.f32 0.17677669, %v1001_v57  ;;  %v358_v59 = vpop.f32.mrb[5].mxu1 }
 0x286   : > { %v372_v60 = vmul.f32 0.17677669, %v358_v59  ;;  %v1002_v61 = vpop.f32.mrb[6].mxu1 }
 0x287   : > { %v361_v62 = vpop.f32.mrb[7].mxu1  ;;  %v377_v63 = vsel %vm135_vm1, %v374_v58, -1e+30 }
 0x288   : > { %v373_v0 = vmul.f32 0.17677669, %v361_v62  ;;  %v384_v1 = vsel %vm203_vm2, %v377_v63, -inf  ;;  %v375_v2 = vsel %vm135_vm1, %v372_v60, -1e+30 }
 0x289   : > { %385 = vmax.xlane.f32.xlu0 %v384_v1  ;;  %v378_v5 = vsel %vm203_vm2, %v375_v2, -inf }
 0x28a   : > { %379 = vmax.xlane.f32.xlu1 %v378_v5  ;;  %v376_v6 = vsel %vm135_vm1, %v373_v0, -1e+30 }
 0x28b   : > { %v381_v8 = vsel %vm203_vm2, %v376_v6, -inf }
 0x28d   : > { %382 = vmax.xlane.f32.xlu0 %v381_v8 }
 0x29b   : > { %414 = vrot.lane.b32.xlu1 %v1202_v31, %s1124_s12 }
 0x29f   : > { %497 = vrot.lane.b32.xlu1 %v1156_v3, %s1125_s13 }
 0x2a3   : > { %412 = vrot.lane.b32.xlu0 %v1197_v29, %s1124_s12  ;;  %499 = vrot.lane.b32.xlu1 %v1158_v4, %s1125_s13 }
 0x2a7   : > { %493 = vrot.lane.b32.xlu0 %v1162_v7, %s1125_s13  ;;  %495 = vrot.lane.b32.xlu1 %v1175_v11, %s1125_s13 }
 0x2ab   : > { %601 = vrot.lane.b32.xlu1 %v1202_v31, %s1125_s13 }
 0x316   : > { %v386_v9 = vpop.xlane.xlu0 %385 }
 0x317   : > { %v389_v10 = vsub.f32 %v377_v63, %v386_v9  ;;  %v380_v12 = vpop.xlane.xlu1 %379 }
 0x318   : > { %v387_v14 = vsub.f32 %v375_v2, %v380_v12 }
 0x319   : > { %v394_v15 = vmul.f32 1.442695, %v389_v10 }
 0x31a   : > { %v390_v16 = vmul.f32 1.442695, %v387_v14  ;;  %v383_v17 = vpop.xlane.xlu0 %382 }
 0x31b   : > { %v388_v18 = vsub.f32 %v376_v6, %v383_v17  ;;  %1074 = vpow2.f32 %v394_v15  ;;  %v415_v21 = vpop.permute.xlu1 %414 }
 0x31c   : > { %1076 = vpow2.f32 %v390_v16  ;;  %v424_v22 = vsel %vm242_vm3, %v415_v21, 0 }
 0x31d   : > { %v392_v19 = vmul.f32 1.442695, %v388_v18 }
 0x31e   : > { %v413_v20 = vpop.permute.xlu0 %412 }
 0x31f   : > { %1078 = vpow2.f32 %v392_v19  ;;  %1003 = vmatprep.subr.bf16.mxu0 %v413_v20  ;;  %v498_v23 = vpop.permute.xlu1 %497 }
 0x320   : > { %1004 = vmatpush3.bf16.msra.mxu0 %v413_v20  ;;  %v508_v28 = vsel %vm136_vm0, %v498_v23, 0 }
 0x321   : > { %1048 = vmatprep.subr.msk.bf16.mxu0 %vm242_vm3, %v415_v21 }
 0x322   : > { %v494_v32 = vpop.permute.xlu0 %493 }
 0x323   : > { %v500_v33 = vpop.permute.xlu1 %499 }
 0x324   : > { %1006 = vmatpush3.bf16.msra.mxu0 %v424_v22  ;;  %v511_v34 = vsel %vm136_vm0, %v500_v33, 0 }
 0x325   : > { %1049 = vmatprep.subr.msk.bf16.mxu0 %vm136_vm0, %v498_v23  ;;  %v1262_v24 = vpop.eup %1074 }
 0x326   : > { %v1264_v25 = vpop.eup %1076  ;;  %v409_v30 = vpack.c.bf16 %v1262_v24, %v1262_v24 }
 0x327   : > { %v496_v35 = vpop.permute.xlu1 %495 }
 0x329   : > { %v1266_v26 = vpop.eup %1078 }
 0x32a   : > { %v408_v27 = vpack.c.bf16 %v1266_v26, %v1264_v25 }
 0x32b   : > { %v602_v59 = vpop.permute.xlu1 %601 }
 0x32c   : > { %1007 = vmatprep.mubr.msk.bf16.mxu0 %vm203_vm2, %v408_v27 }
 0x32d   : > { %1008 = vmatmul.mubr.msk.bf16.vlgmr.msra.gmra.mrb[4].mxu0 %vm203_vm2, %v409_v30 }
 0x32e   : > { %1012 = vmatpush3.bf16.xpose.msra.mxu0 %v508_v28  ;;  %1015 = vmatprep.mubr.msk.bf16.mxu0 %vm136_vm0, %v494_v32 }
 0x32f   : > { %1050 = vmatprep.subr.msk.bf16.mxu0 %vm136_vm0, %v500_v33 }
 0x336   : > { %1014 = vmatpush3.bf16.xpose.msra.mxu0 %v511_v34 }
 0x33d   : > { %1016 = vmatmul.mubr.msk.bf16.vlgmr.msra.gmra.mrb[8].mxu0 %vm136_vm0, %v496_v35 }
 0x400   : > { %v1279_v36 = vpop.f32.mrb[4].mxu0 }
 0x401   : > { %v1281_v37 = vpop.f32.mrb[5].mxu0 }
 0x402   : > { %v1010_v38 = vpop.f32.mrb[6].mxu0 }
 0x403   : > { %v1283_v39 = vpop.f32.mrb[7].mxu0 }
 0x410   : > { %v1017_v40 = vpop.f32.mrb[8].mxu0 }
 0x411   : > { %v563_v41 = vmul.f32 0.17677669, %v1017_v40  ;;  %v547_v42 = vpop.f32.mrb[9].mxu0 }
 0x412   : > { %v561_v46 = vmul.f32 0.17677669, %v547_v42  ;;  %v1018_v47 = vpop.f32.mrb[10].mxu0 }
 0x413   : > { %v550_v48 = vpop.f32.mrb[11].mxu0  ;;  %v566_v49 = vsel %vm135_vm1, %v563_v41, -1e+30  ;;  %v396_v47 = vsel %vm203_vm2, %v1264_v25, 0.0 }
 0x414   : > { %v562_v50 = vmul.f32 0.17677669, %v550_v48  ;;  %v573_v51 = vsel %vm203_vm2, %v566_v49, -inf  ;;  %v564_v52 = vsel %vm135_vm1, %v561_v46, -1e+30  ;;  %v399_v48 = vsel %vm203_vm2, %v1266_v26, 0.0 }
 0x415   : > { %574 = vmax.xlane.f32.xlu0 %v573_v51  ;;  %v567_v58 = vsel %vm203_vm2, %v564_v52, -inf }
 0x416   : > { %v565_v55 = vsel %vm135_vm1, %v562_v50, -1e+30 }
 0x417   : > { %v570_v57 = vsel %vm203_vm2, %v565_v55, -inf }
 0x418   : > { %571 = vmax.xlane.f32.xlu1 %v570_v57 }
 0x419   : > { %568 = vmax.xlane.f32.xlu0 %v567_v58 }
 0x429   : > { %684 = vrot.lane.b32.xlu1 %v1156_v3, %s1126_s14 }
 0x42d   : > { %680 = vrot.lane.b32.xlu1 %v1162_v7, %s1126_s14 }
 0x42f   : > { %599 = vrot.lane.b32.xlu0 %v1197_v29, %s1125_s13 }
 0x433   : > { %686 = vrot.lane.b32.xlu0 %v1158_v4, %s1126_s14 }
 0x437   : > { %682 = vrot.lane.b32.xlu0 %v1175_v11, %s1126_s14  ;;  %v611_v11 = vsel %vm242_vm3, %v602_v59, 0 }
 0x4a2   : > { %v575_v60 = vpop.xlane.xlu0 %574 }
 0x4a3   : > { %v578_v61 = vsub.f32 %v566_v49, %v575_v60  ;;  %v402_v49 = vsel %vm203_vm2, %v1262_v24, 0.0 }
 0x4a5   : > { %v583_v62 = vmul.f32 1.442695, %v578_v61  ;;  %v572_v63 = vpop.xlane.xlu1 %571 }
 0x4a6   : > { %v577_v0 = vsub.f32 %v565_v55, %v572_v63  ;;  %v569_v1 = vpop.xlane.xlu0 %568 }
 0x4a7   : > { %v576_v3 = vsub.f32 %v564_v52, %v569_v1  ;;  %1080 = vpow2.f32 %v583_v62 }
 0x4a8   : > { %v581_v2 = vmul.f32 1.442695, %v577_v0 }
 0x4a9   : > { %v579_v7 = vmul.f32 1.442695, %v576_v3  ;;  %v685_v4 = vpop.permute.xlu1 %684 }
 0x4aa   : > { %1082 = vpow2.f32 %v581_v2  ;;  %v600_v5 = vpop.permute.xlu0 %599  ;;  %v695_v12 = vsel %vm136_vm0, %v685_v4, 0 }
 0x4ab   : > { %1084 = vpow2.f32 %v579_v7  ;;  %1019 = vmatprep.subr.bf16.mxu1 %v600_v5 }
 0x4ac   : > { %1020 = vmatpush3.bf16.msra.mxu1 %v600_v5 }
 0x4ad   : > { %1051 = vmatprep.subr.msk.bf16.mxu1 %vm242_vm3, %v602_v59  ;;  %v681_v15 = vpop.permute.xlu1 %680 }
 0x4ae   : > { %v687_v16 = vpop.permute.xlu0 %686 }
 0x4af   : > { %v698_v17 = vsel %vm136_vm0, %v687_v16, 0 }
 0x4b0   : > { %1022 = vmatpush3.bf16.msra.mxu1 %v611_v11  ;;  %v225_v11 = vsel %vm203_vm2, %v1217_v45, 0.0 }
 0x4b1   : > { %1052 = vmatprep.subr.msk.bf16.mxu1 %vm136_vm0, %v685_v4  ;;  %v1081_v6 = vpop.eup %1080  ;;  %v222_v4 = vsel %vm203_vm2, %v1215_v44, 0.0 }
 0x4b2   : > { %v598_v14 = vpack.c.bf16 %v1081_v6, %v1081_v6  ;;  %v683_v18 = vpop.permute.xlu0 %682 }
 0x4b4   : > { %v1083_v8 = vpop.eup %1082 }
 0x4b5   : > { %v1085_v9 = vpop.eup %1084 }
 0x4b6   : > { %v597_v10 = vpack.c.bf16 %v1083_v8, %v1085_v9  ;;  %v585_v13 = vsel %vm203_vm2, %v1085_v9, 0.0 }
 0x4b8   : > { %1023 = vmatprep.mubr.msk.bf16.mxu1 %vm203_vm2, %v597_v10 }
 0x4b9   : > { %1024 = vmatmul.mubr.msk.bf16.vlgmr.msra.gmra.mrb[8].mxu1 %vm203_vm2, %v598_v14 }
 0x4ba   : > { %1028 = vmatpush3.bf16.xpose.msra.mxu1 %v695_v12  ;;  %1031 = vmatprep.mubr.msk.bf16.mxu1 %vm136_vm0, %v681_v15 }
 0x4bb   : > { %1053 = vmatprep.subr.msk.bf16.mxu1 %vm136_vm0, %v687_v16 }
 0x4c2   : > { %1030 = vmatpush3.bf16.xpose.msra.mxu1 %v698_v17 }
 0x4c9   : > { %1032 = vmatmul.mubr.msk.bf16.vlgmr.msra.gmra.mrb[12].mxu1 %vm136_vm0, %v683_v18 }
 0x58c   : > { %v1314_v19 = vpop.f32.mrb[8].mxu1 }
 0x58d   : > { %v1316_v20 = vpop.f32.mrb[9].mxu1 }
 0x58e   : > { %v1026_v21 = vpop.f32.mrb[10].mxu1 }
 0x58f   : > { %v1318_v22 = vpop.f32.mrb[11].mxu1 }
 0x59c   : > { %v1033_v23 = vpop.f32.mrb[12].mxu1 }
 0x59d   : > { %v750_v27 = vmul.f32 0.17677669, %v1033_v23  ;;  %v734_v28 = vpop.f32.mrb[13].mxu1 }
 0x59e   : > { %v748_v30 = vmul.f32 0.17677669, %v734_v28  ;;  %v1034_v32 = vpop.f32.mrb[14].mxu1 }
 0x59f   : > { %v737_v33 = vpop.f32.mrb[15].mxu1  ;;  %v753_v34 = vsel %vm135_vm1, %v750_v27, -1e+30 }
 0x5a0   : > { %v749_v35 = vmul.f32 0.17677669, %v737_v33  ;;  %v760_v38 = vsel %vm203_vm2, %v753_v34, -inf  ;;  %v751_v40 = vsel %vm135_vm1, %v748_v30, -1e+30 }
 0x5a1   : > { %761 = vmax.xlane.f32.xlu0 %v760_v38  ;;  %v754_v41 = vsel %vm203_vm2, %v751_v40, -inf }
 0x5a2   : > { %755 = vmax.xlane.f32.xlu1 %v754_v41  ;;  %v752_v42 = vsel %vm135_vm1, %v749_v35, -1e+30 }
 0x5a3   : > { %v757_v46 = vsel %vm203_vm2, %v752_v42, -inf }
 0x5a5   : > { %758 = vmax.xlane.f32.xlu0 %v757_v46 }
 0x5b3   : > { %788 = vrot.lane.b32.xlu1 %v1202_v31, %s1126_s14  ;;  %v591_v31 = vsel %vm203_vm2, %v1081_v6, 0.0  ;;  %v228_v6 = vsel %vm203_vm2, %v1213_v43, 0.0 }
 0x5bb   : > { %786 = vrot.lane.b32.xlu0 %v1197_v29, %s1126_s14  ;;  %v588_v29 = vsel %vm203_vm2, %v1083_v8, 0.0 }
 0x5d7   : > { %397 = vadd.xlane.f32.xlu1 %v396_v47 }
 0x5da   : > { %400 = vadd.xlane.f32.xlu0 %v399_v48 }
 0x5db   : > { %586 = vadd.xlane.f32.xlu1 %v585_v13 }
 0x5de   : > { %403 = vadd.xlane.f32.xlu0 %v402_v49 }
 0x5df   : > { %592 = vadd.xlane.f32.xlu1 %v591_v31 }
 0x5e2   : > { %589 = vadd.xlane.f32.xlu0 %v588_v29 }
 0x62e   : > { %v762_v50 = vpop.xlane.xlu0 %761 }
 0x62f   : > { %v765_v25 = vsub.f32 %v753_v34, %v762_v50  ;;  %v756_v51 = vpop.xlane.xlu1 %755 }
 0x630   : > { %v763_v52 = vsub.f32 %v751_v40, %v756_v51 }
 0x631   : > { %v770_v55 = vmul.f32 1.442695, %v765_v25 }
 0x632   : > { %v766_v26 = vmul.f32 1.442695, %v763_v52  ;;  %v759_v57 = vpop.xlane.xlu0 %758 }
 0x633   : > { %v764_v58 = vsub.f32 %v752_v42, %v759_v57  ;;  %v789_v24 = vpop.permute.xlu1 %788 }
 0x634   : > { %1086 = vpow2.f32 %v766_v26  ;;  %v798_v61 = vsel %vm242_vm3, %v789_v24, 0 }
 0x635   : > { %v768_v59 = vmul.f32 1.442695, %v764_v58  ;;  %1088 = vpow2.f32 %v770_v55 }
 0x636   : > { %v787_v60 = vpop.permute.xlu0 %786 }
 0x637   : > { %1090 = vpow2.f32 %v768_v59  ;;  %1035 = vmatprep.subr.bf16.mxu0 %v787_v60 }
 0x638   : > { %1036 = vmatpush3.bf16.msra.mxu0 %v787_v60 }
 0x639   : > { %1054 = vmatprep.subr.msk.bf16.mxu0 %vm242_vm3, %v789_v24 }
 0x63c   : > { %1038 = vmatpush3.bf16.msra.mxu0 %v798_v61 }
 0x63e   : > { %v1087_v62 = vpop.eup %1086 }
 0x63f   : > { %v772_v63 = vsel %vm203_vm2, %v1087_v62, 0.0  ;;  %v1089_v0 = vpop.eup %1088 }
 0x640   : > { %773 = vadd.xlane.f32.xlu0 %v772_v63  ;;  %v778_v7 = vsel %vm203_vm2, %v1089_v0, 0.0  ;;  %v785_v5 = vpack.c.bf16 %v1089_v0, %v1089_v0 }
 0x641   : > { %v1091_v1 = vpop.eup %1090 }
 0x642   : > { %v775_v3 = vsel %vm203_vm2, %v1091_v1, 0.0  ;;  %v784_v2 = vpack.c.bf16 %v1091_v1, %v1087_v62 }
 0x643   : > { %776 = vadd.xlane.f32.xlu1 %v775_v3 }
 0x644   : > { %779 = vadd.xlane.f32.xlu0 %v778_v7  ;;  %1039 = vmatprep.mubr.msk.bf16.mxu0 %vm203_vm2, %v784_v2 }
 0x645   : > { %1040 = vmatmul.mubr.msk.bf16.vlgmr.msra.gmra.mrb[12].mxu0 %vm203_vm2, %v785_v5 }
 0x647   : > { %223 = vadd.xlane.f32.xlu1 %v222_v4 }
 0x648   : > { %226 = vadd.xlane.f32.xlu0 %v225_v11 }
 0x64b   : > { %229 = vadd.xlane.f32.xlu1 %v228_v6 }
 0x664   : > { %v398_v8 = vpop.xlane.xlu1 %397 }
 0x665   : > { %1092 = vrcp.f32 %v398_v8 }
 0x667   : > { %v401_v9 = vpop.xlane.xlu0 %400 }
 0x668   : > { %1094 = vrcp.f32 %v401_v9  ;;  %v587_v10 = vpop.xlane.xlu1 %586 }
 0x66b   : > { %v404_v12 = vpop.xlane.xlu0 %403 }
 0x66c   : > { %1096 = vrcp.f32 %v404_v12  ;;  %v593_v15 = vpop.xlane.xlu1 %592 }
 0x66d   : > { %1098 = vrcp.f32 %v587_v10 }
 0x66f   : > { %v1093_v14 = vpop.eup %1092  ;;  %v590_v44 = vpop.xlane.xlu0 %589 }
 0x670   : > { %1100 = vrcp.f32 %v590_v44  ;;  %v474_v16 = vmul.f32 %v1093_v14, %v1281_v37 }
 0x671   : > { %1102 = vrcp.f32 %v593_v15 }
 0x672   : > { %v1095_v45 = vpop.eup %1094  ;;  %480 = vrot.lane.b32.xlu0 %v474_v16, %s1126_s14 }
 0x673   : > { %v475_v43 = vmul.f32 %v1095_v45, %v1283_v39 }
 0x675   : > { %482 = vrot.lane.b32.xlu1 %v475_v43, %s1126_s14 }
 0x676   : > { %v1097_v17 = vpop.eup %1096 }
 0x677   : > { %v476_v18 = vmul.f32 %v1097_v17, %v1279_v36  ;;  %v1099_v21 = vpop.eup %1098 }
 0x678   : > { %v661_v27 = vmul.f32 %v1099_v21, %v1316_v20 }
 0x679   : > { %484 = vrot.lane.b32.xlu1 %v476_v18, %s1126_s14 }
 0x67a   : > { %v1101_v23 = vpop.eup %1100 }
 0x67b   : > { %v662_v37 = vmul.f32 %v1101_v23, %v1318_v22  ;;  %v1103_v28 = vpop.eup %1102 }
 0x67c   : > { %v663_v39 = vmul.f32 %v1103_v28, %v1314_v19 }
 0x67d   : > { %667 = vrot.lane.b32.xlu1 %v661_v27, %s1125_s13  ;;  %669 = vrot.lane.b32.xlu0 %v662_v37, %s1125_s13 }
 0x681   : > { %671 = vrot.lane.b32.xlu1 %v663_v39, %s1125_s13 }
 0x6cd   : > { %v774_v30 = vpop.xlane.xlu0 %773 }
 0x6d0   : > { %v777_v36 = vpop.xlane.xlu1 %776 }
 0x6d1   : > { %v780_v32 = vpop.xlane.xlu0 %779 }
 0x6d4   : > { %v224_v33 = vpop.xlane.xlu1 %223 }
 0x6d5   : > { %1104 = vrcp.f32 %v224_v33  ;;  %v227_v34 = vpop.xlane.xlu0 %226 }
 0x6d6   : > { %1106 = vrcp.f32 %v227_v34 }
 0x6d8   : > { %v230_v20 = vpop.xlane.xlu1 %229 }
 0x6d9   : > { %1108 = vrcp.f32 %v230_v20 }
 0x6da   : > { %1110 = vrcp.f32 %v780_v32 }
 0x6db   : > { %1112 = vrcp.f32 %v774_v30 }
 0x6dc   : > { %1114 = vrcp.f32 %v777_v36 }
 0x6df   : > { %v1105_v22 = vpop.eup %1104 }
 0x6e0   : > { %v1107_v19 = vpop.eup %1106  ;;  %v294_v35 = vmul.f32 %v1105_v22, %v1232_v54 }
 0x6e1   : > { %v295_v38 = vmul.f32 %v1107_v19, %v1234_v56 }
 0x6e2   : > { %297 = vst.msk [vmem:[%s1371_s18] sm:$0xff] %vm136_vm0, %v294_v35 }
 0x6e3   : > { %v1109_v40 = vpop.eup %1108  ;;  %298 = vst.msk [vmem:[%s1371_s18 + $0x8] sm:$0xff] %vm136_vm0, %v295_v38 }
 0x6e4   : > { %v296_v41 = vmul.f32 %v1109_v40, %v1230_v53  ;;  %v481_v42 = vpop.permute.xlu0 %480  ;;  %v1111_v53 = vpop.eup %1110 }
 0x6e5   : > { %490 = vst.msk [vmem:[%s1371_s18] sm:$0xff] %vm489_vm4, %v481_v42  ;;  %v1113_v49 = vpop.eup %1112 }
 0x6e6   : > { %299 = vst.msk [vmem:[%s1371_s18 + $0x10] sm:$0xff] %vm136_vm0, %v296_v41  ;;  %v1115_v51 = vpop.eup %1114 }
 0x6e7   : > { %v483_v46 = vpop.permute.xlu1 %482 }
 0x6e8   : > { %491 = vst.msk [vmem:[%s1371_s18 + $0x8] sm:$0xff] %vm489_vm4, %v483_v46 }
 0x6eb   : > { %v485_v54 = vpop.permute.xlu1 %484 }
 0x6ec   : > { %492 = vst.msk [vmem:[%s1371_s18 + $0x10] sm:$0xff] %vm489_vm4, %v485_v54 }
 0x6ef   : > { %v668_v56 = vpop.permute.xlu1 %667  ;;  %v670_v47 = vpop.permute.xlu0 %669 }
 0x6f0   : > { %677 = vst.msk [vmem:[%s1371_s18] sm:$0xff] %vm676_vm5, %v668_v56  ;;  %678 = vst.msk [vmem:[%s1371_s18 + $0x8] sm:$0xff] %vm676_vm5, %v670_v47 }
 0x6f3   : > { %v672_v48 = vpop.permute.xlu1 %671 }
 0x6f4   : > { %679 = vst.msk [vmem:[%s1371_s18 + $0x10] sm:$0xff] %vm676_vm5, %v672_v48 }
 0x718   : > { %v1041_v13 = vpop.f32.mrb[12].mxu0 }
 0x719   : > { %v850_v31 = vmul.f32 %v1111_v53, %v1041_v13  ;;  %v834_v29 = vpop.f32.mrb[13].mxu0 }
 0x71a   : > { %v848_v50 = vmul.f32 %v1113_v49, %v834_v29  ;;  %v1042_v25 = vpop.f32.mrb[14].mxu0 }
 0x71b   : > { %v837_v52 = vpop.f32.mrb[15].mxu0 }
 0x71c   : > { %v849_v55 = vmul.f32 %v1115_v51, %v837_v52  ;;  %854 = vrot.lane.b32.xlu0 %v848_v50, %s1124_s12 }
 0x71e   : > { %856 = vrot.lane.b32.xlu1 %v849_v55, %s1124_s12 }
 0x720   : > { %858 = vrot.lane.b32.xlu0 %v850_v31, %s1124_s12 }
 0x78e   : > { %v855_v26 = vpop.permute.xlu0 %854 }
 0x78f   : > { %864 = vst.msk [vmem:[%s1371_s18] sm:$0xff] %vm863_vm6, %v855_v26 }
 0x790   : > { %v857_v57 = vpop.permute.xlu1 %856 }
 0x791   : > { %865 = vst.msk [vmem:[%s1371_s18 + $0x8] sm:$0xff] %vm863_vm6, %v857_v57 }
 0x792   : > { %v859_v58 = vpop.permute.xlu0 %858 }
 0x793   : > { %866 = vst.msk [vmem:[%s1371_s18 + $0x10] sm:$0xff] %vm863_vm6, %v859_v58 }
 0x794 PF: > { %s11_s6 = sadd.s32 1, %s1122_s6  }
 0x795   : > { %p8_p4 = scmp.ge.s32.totalorder %s11_s6, 4  }
 0x797   :  { %10 = sbr.rel (!%p8_p4) target bundleno = 1 (0x1), region = 54 }

// kernel: vit_forward.18
= control target key start
LH: loop header
LB: loop body
LE: loop exit
PB: predicated region body
PF: predicated region fallthrough
CT: control target
= control target key end

     0   :  { %s978_s18 = smov 0   ;;  %s980_s19 = smov 0   ;;  %s1087_s0 = inlined_call_operand.vmem [shape: f32[48,128], index: 0, kind: input, shape index: {}]   ;;  %s1088_s1 = inlined_call_operand.vmem [shape: bf16[128,256], index: 1, kind: input, shape index: {}]   ;;  %s1089_s2 = inlined_call_operand.vmem [shape: f32[1,256], index: 2, kind: input, shape index: {}]   ;;  %s1090_s3 = inlined_call_operand.vmem [shape: f32[1,128], index: 3, kind: input, shape index: {}]   ;;  %s1091_s4 = inlined_call_operand.vmem [shape: f32[1,128], index: 4, kind: input, shape index: {}]   ;;  %s1092_s5 = inlined_call_operand.vmem [shape: f32[48,256], index: 5, kind: output, shape index: {}]  }
   0x1   :  { %s982_s20 = smov 0  }
   0x2 LB: > { %s34_s21 = sadd.s32 1, %s941_s19  ;;  %p800_p0 = scmp.ge.s32.totalorder %s945_s20, 1  ;;  %s945_s20 = sphi %s982_s20, %s15_s20   ;;  %s941_s19 = sphi %s980_s19, %s1094_s19   ;;  %s937_s18 = sphi %s978_s18, %s1093_s18  }
   0x3   : > { %p36_p1 = scmp.ge.s32.totalorder %s34_s21, 2  ;;  %p259_p2 = scmp.lt.s32.totalorder %s945_s20, 3 }
   0x5   : > { %s1096_s21 = smov (%p36_p1, %s34_s21), 0  ;;  %p260_p3 = pnand %p800_p0, %p259_p2 }
   0x6   : > { %s315_s22 = smul.u32 (!%p260_p3), 3, %s937_s18  ;;  %v879_v15 = vld [vmem:[%s1088_s1 + $0x4] ss:$8 sps:$4 sm:$0xff] (!%p260_p3)   ;;  %v881_v16 = vld [vmem:[%s1088_s1] ss:$8 sps:$4 sm:$0xff] (!%p260_p3)   ;;  %v947_v31 = vmov (!%p260_p3), 0   ;;  %v458_v59 = vlaneseq (!%p260_p3) }
   0x7   : > { %263 = sbr.rel (%p260_p3) target bundleno = 580 (0x244), region = 40  ;;  %558 = vmatprep.subr.bf16.mxu0 (!%p260_p3), %v879_v15  ;;  %838 = vmatprep.subr.bf16.mxu1 (!%p260_p3), %v879_v15  ;;  %v882_v17 = vld [vmem:[%s1088_s1 + $0x14] ss:$8 sps:$4 sm:$0xff] (!%p260_p3)   ;;  %v884_v18 = vld [vmem:[%s1088_s1 + $0x10] ss:$8 sps:$4 sm:$0xff] (!%p260_p3)  }
   0x8   : > { %p316_p4 = scmp.lt.s32.totalorder (!%p260_p3), %s315_s22, 5  ;;  %559 = vmatpush1.bf16.msra.mxu0 (!%p260_p3), %v881_v16  ;;  %846 = vmatpush1.bf16.msra.mxu1 (!%p260_p3), %v881_v16  ;;  %v885_v19 = vld [vmem:[%s1088_s1 + $0x24] ss:$8 sps:$4 sm:$0xff] (!%p260_p3)   ;;  %v887_v20 = vld [vmem:[%s1088_s1 + $0x20] ss:$8 sps:$4 sm:$0xff] (!%p260_p3)   ;;  %v459_v60 = vshrl.u32 (!%p260_p3), %v458_v59, 7 }
   0x9   : > { %560 = vmatprep.subr.bf16.mxu0 (!%p260_p3), %v882_v17  ;;  %839 = vmatprep.subr.bf16.mxu1 (!%p260_p3), %v882_v17  ;;  %v888_v21 = vld [vmem:[%s1088_s1 + $0x34] ss:$8 sps:$4 sm:$0xff] (!%p260_p3)   ;;  %v890_v22 = vld [vmem:[%s1088_s1 + $0x30] ss:$8 sps:$4 sm:$0xff] (!%p260_p3)   ;;  %v891_v23 = vld [vmem:[%s1088_s1 + $0x44] ss:$8 sps:$4 sm:$0xff] (!%p260_p3)  }
   0xa   : > { %v893_v24 = vld [vmem:[%s1088_s1 + $0x40] ss:$8 sps:$4 sm:$0xff] (!%p260_p3)   ;;  %v894_v25 = vld [vmem:[%s1088_s1 + $0x54] ss:$8 sps:$4 sm:$0xff] (!%p260_p3)   ;;  %v896_v26 = vld [vmem:[%s1088_s1 + $0x50] ss:$8 sps:$4 sm:$0xff] (!%p260_p3)   ;;  %590 = vmatprep.mubr.bf16.mxu0 (!%p260_p3), %v947_v31  ;;  %600 = vmatprep.mubr.bf16.mxu1 (!%p260_p3), %v947_v31 }
   0xb   : > { %v897_v27 = vld [vmem:[%s1088_s1 + $0x64] ss:$8 sps:$4 sm:$0xff] (!%p260_p3)   ;;  %v899_v28 = vld [vmem:[%s1088_s1 + $0x60] ss:$8 sps:$4 sm:$0xff] (!%p260_p3)   ;;  %v900_v29 = vld [vmem:[%s1088_s1 + $0x74] ss:$8 sps:$4 sm:$0xff] (!%p260_p3)  }
   0xc   : > { %561 = vmatpush1.bf16.msra.mxu0 (!%p260_p3), %v884_v18  ;;  %847 = vmatpush1.bf16.msra.mxu1 (!%p260_p3), %v884_v18  ;;  %v902_v30 = vld [vmem:[%s1088_s1 + $0x70] ss:$8 sps:$4 sm:$0xff] (!%p260_p3)   ;;  %v804_v43 = vld [vmem:[%s1090_s3] ss:$0 sm:$0xff] (!%p260_p3)  ;;  %v460_v61 = vsub.s32 (!%p260_p3), 0, %v459_v60  ;;  %v464_v63 = vsub.s32 (!%p260_p3), 1, %v459_v60 }
   0xd   : > { %562 = vmatprep.subr.bf16.mxu0 (!%p260_p3), %v885_v19  ;;  %840 = vmatprep.subr.bf16.mxu1 (!%p260_p3), %v885_v19  ;;  %v805_v49 = vld [vmem:[%s1091_s4] ss:$0 sm:$0xff] (!%p260_p3) }
   0xe   : > { %s1098_s22 = smov (!%p316_p4, %s315_s22), 5  ;;  %v456_v62 = vld [vmem:[%s1089_s2] sm:$0x3] }
   0xf   : > { %s801_s23 = sshll.u32 %s1098_s22, 3 }
  0x10   : > { %s322_s26 = scalar_lea.vmem %s1087_s0, %s801_s23  ;;  %563 = vmatpush1.bf16.msra.mxu0 %v887_v20  ;;  %848 = vmatpush1.bf16.msra.mxu1 %v887_v20  ;;  %s829_s23 = sshll.u32 %s1098_s22, 4 }
  0x11   : > { %v364_v0 = vld [vmem:[%s322_s26] sm:$0xff]  ;;  %v366_v1 = vld [vmem:[%s322_s26 + $0x10] sm:$0xff]  ;;  %v365_v2 = vld [vmem:[%s322_s26 + $0x8] sm:$0xff]  ;;  %564 = vmatprep.subr.bf16.mxu0 %v888_v21  ;;  %841 = vmatprep.subr.bf16.mxu1 %v888_v21  ;;  %s356_s26 = scalar_lea.vmem %s1092_s5, %s829_s23 }
  0x12   : > { %367 = vadd.xlane.f32.xlu0 %v364_v0  ;;  %371 = vadd.xlane.f32.xlu1 %v366_v1 }
  0x14   : > { %565 = vmatpush1.bf16.msra.mxu0 %v890_v22  ;;  %849 = vmatpush1.bf16.msra.mxu1 %v890_v22 }
  0x15   : > { %566 = vmatprep.subr.bf16.mxu0 %v891_v23  ;;  %842 = vmatprep.subr.bf16.mxu1 %v891_v23 }
  0x16   : > { %369 = vadd.xlane.f32.xlu0 %v365_v2 }
  0x18   : > { %567 = vmatpush1.bf16.msra.mxu0 %v893_v24  ;;  %850 = vmatpush1.bf16.msra.mxu1 %v893_v24 }
  0x19   : > { %568 = vmatprep.subr.bf16.mxu0 %v894_v25  ;;  %843 = vmatprep.subr.bf16.mxu1 %v894_v25 }
  0x1c   : > { %569 = vmatpush1.bf16.msra.mxu0 %v896_v26  ;;  %851 = vmatpush1.bf16.msra.mxu1 %v896_v26 }
  0x1d   : > { %570 = vmatprep.subr.bf16.mxu0 %v897_v27  ;;  %844 = vmatprep.subr.bf16.mxu1 %v897_v27 }
  0x20   : > { %571 = vmatpush1.bf16.msra.mxu0 %v899_v28  ;;  %852 = vmatpush1.bf16.msra.mxu1 %v899_v28 }
  0x21   : > { %572 = vmatprep.subr.bf16.mxu0 %v900_v29  ;;  %845 = vmatprep.subr.bf16.mxu1 %v900_v29 }
  0x24   : > { %573 = vmatpush1.bf16.msra.mxu0 %v902_v30  ;;  %853 = vmatpush1.bf16.msra.mxu1 %v902_v30 }
  0x9f   : > { %v368_v3 = vpop.xlane.xlu0 %367  ;;  %v372_v4 = vpop.xlane.xlu1 %371 }
  0xa0   : > { %v374_v5 = vmul.f32 0.0078125, %v368_v3  ;;  %v376_v6 = vmul.f32 0.0078125, %v372_v4 }
  0xa2   : > { %v1002_v7 = vsub.f32 %v364_v0, %v374_v5  ;;  %v1004_v8 = vsub.f32 %v366_v1, %v376_v6  ;;  %v461_v0 = vrot.slane %v456_v62, %v460_v61  ;;  %v465_v1 = vrot.slane %v456_v62, %v464_v63 }
  0xa3   : > { %v370_v9 = vpop.xlane.xlu0 %369 }
  0xa4   : > { %v375_v10 = vmul.f32 0.0078125, %v370_v9  ;;  %v380_v11 = vmul.f32 %v1002_v7, %v1002_v7  ;;  %v382_v13 = vmul.f32 %v1004_v8, %v1004_v8 }
  0xa6   : > { %v1008_v12 = vsub.f32 %v365_v2, %v375_v10  ;;  %383 = vadd.xlane.f32.xlu1 %v380_v11 }
  0xa8   : > { %v381_v14 = vmul.f32 %v1008_v12, %v1008_v12 }
  0xaa   : > { %387 = vadd.xlane.f32.xlu1 %v382_v13  ;;  %385 = vadd.xlane.f32.xlu0 %v381_v14 }
 0x133   : > { %v384_v32 = vpop.xlane.xlu1 %383 }
 0x134   : > { %v389_v33 = vmul.f32 0.0078125, %v384_v32 }
 0x136   : > { %v392_v34 = vadd.f32 1e-05, %v389_v33 }
 0x137   : > { %v388_v35 = vpop.xlane.xlu1 %387  ;;  %v386_v36 = vpop.xlane.xlu0 %385 }
 0x138   : > { %905 = vrsqrt.f32 %v392_v34  ;;  %v391_v37 = vmul.f32 0.0078125, %v388_v35  ;;  %v390_v38 = vmul.f32 0.0078125, %v386_v36 }
 0x13a   : > { %v394_v39 = vadd.f32 1e-05, %v391_v37  ;;  %v393_v40 = vadd.f32 1e-05, %v390_v38 }
 0x13c   : > { %907 = vrsqrt.f32 %v394_v39 }
 0x13d   : > { %909 = vrsqrt.f32 %v393_v40 }
 0x142   : > { %v906_v41 = vpop.eup %905 }
 0x143   : > { %v398_v42 = vmul.f32 %v906_v41, %v1002_v7 }
 0x145   : > { %v408_v47 = vmul.f32 %v804_v43, %v398_v42 }
 0x146   : > { %v908_v44 = vpop.eup %907 }
 0x147   : > { %v910_v45 = vpop.eup %909  ;;  %v400_v46 = vmul.f32 %v908_v44, %v1004_v8  ;;  %v418_v53 = vadd.f32 %v805_v49, %v408_v47 }
 0x148   : > { %v399_v48 = vmul.f32 %v910_v45, %v1008_v12 }
 0x149   : > { %v410_v50 = vmul.f32 %v804_v43, %v400_v46 }
 0x14a   : > { %v409_v51 = vmul.f32 %v804_v43, %v399_v48 }
 0x14b   : > { %v420_v52 = vadd.f32 %v805_v49, %v410_v50 }
 0x14c   : > { %v419_v54 = vadd.f32 %v805_v49, %v409_v51 }
 0x14d   : > { %v832_v55 = vpack.c.bf16 %v420_v52, %v420_v52 }
 0x14e   : > { %v836_v56 = vpack.c.bf16 %v419_v54, %v418_v53 }
 0x14f   : > { %436 = vst [vmem:[#allocation2 + $0x8] sm:$0xf] %v832_v55 }
 0x150   : > { %837 = vst [vmem:[#allocation2] sm:$0xff] %v836_v56  }
 0x156   : > { %v904_v57 = vld [vmem:[#allocation2 + $0x8] ss:$0 sps:$4 sm:$0xff]  }
 0x157   : > { %v903_v58 = vld [vmem:[#allocation2] sm:$0xff]   ;;  %601 = vmatmul.mubr.bf16.vlgmr.msra.gmra.mrb[0].mxu1 %v904_v57 }
 0x158   : > { %591 = vmatmul.mubr.bf16.vlgmr.msra.gmra.mrb[0].mxu0 %v903_v58 }
 0x22a   : > { %v602_v2 = vpop.f32.mrb[0].mxu1 }
 0x22b   : > { %v592_v3 = vpop.f32.mrb[0].mxu0  ;;  %v603_v4 = vadd.f32 %v602_v2, %v461_v0  ;;  %v604_v5 = vpop.f32.mrb[1].mxu1 }
 0x22c   : > { %v593_v6 = vadd.f32 %v592_v3, %v461_v0  ;;  %v594_v7 = vpop.f32.mrb[1].mxu0  ;;  %v605_v8 = vadd.f32 %v604_v5, %v465_v1  ;;  %v606_v9 = vpop.f32.mrb[2].mxu1 }
 0x22d   : > { %v619_v10 = vmul.f32 0.70710677, %v603_v4  ;;  %v595_v11 = vadd.f32 %v594_v7, %v465_v1  ;;  %v596_v12 = vpop.f32.mrb[2].mxu0  ;;  %v607_v13 = vpop.f32.mrb[3].mxu1  ;;  %v613_v38 = vmul.f32 0.5, %v603_v4 }
 0x22e   : > { %v615_v14 = vmul.f32 0.70710677, %v593_v6  ;;  %v620_v15 = vmul.f32 0.70710677, %v605_v8  ;;  %v597_v17 = vadd.f32 %v596_v12, %v461_v0  ;;  %v598_v18 = vpop.f32.mrb[3].mxu0  ;;  %v609_v25 = vmul.f32 0.5, %v593_v6 }
 0x22f   : > { %911 = verf.f32 %v619_v10  ;;  %v616_v16 = vmul.f32 0.70710677, %v595_v11  ;;  %v599_v19 = vadd.f32 %v598_v18, %v465_v1  ;;  %v610_v28 = vmul.f32 0.5, %v595_v11 }
 0x230   : > { %913 = verf.f32 %v615_v14  ;;  %v617_v20 = vmul.f32 0.70710677, %v597_v17  ;;  %v611_v36 = vmul.f32 0.5, %v597_v17  ;;  %v614_v41 = vmul.f32 0.5, %v605_v8 }
 0x231   : > { %915 = verf.f32 %v616_v16  ;;  %v618_v21 = vmul.f32 0.70710677, %v599_v19  ;;  %v612_v39 = vmul.f32 0.5, %v599_v19 }
 0x232   : > { %917 = verf.f32 %v620_v15 }
 0x233   : > { %919 = verf.f32 %v617_v20 }
 0x234   : > { %921 = verf.f32 %v618_v21 }
 0x239   : > { %v912_v22 = vpop.eup %911 }
 0x23a   : > { %v914_v23 = vpop.eup %913  ;;  %v631_v32 = vadd.f32 1.0, %v912_v22 }
 0x23b   : > { %v916_v24 = vpop.eup %915  ;;  %v627_v26 = vadd.f32 1.0, %v914_v23 }
 0x23c   : > { %v918_v27 = vpop.eup %917  ;;  %v628_v29 = vadd.f32 1.0, %v916_v24  ;;  %v637_v43 = vmul.f32 %v631_v32, %v613_v38 }
 0x23d   : > { %v920_v30 = vpop.eup %919  ;;  %v633_v31 = vmul.f32 %v627_v26, %v609_v25  ;;  %v632_v35 = vadd.f32 1.0, %v918_v27 }
 0x23e   : > { %v922_v33 = vpop.eup %921  ;;  %v634_v34 = vmul.f32 %v628_v29, %v610_v28  ;;  %v629_v37 = vadd.f32 1.0, %v920_v30  ;;  %643 = vst [vmem:[%s356_s26 + $0x20] sm:$0xff] %v637_v43 }
 0x23f   : > { %639 = vst [vmem:[%s356_s26] sm:$0xff] %v633_v31  ;;  %v630_v40 = vadd.f32 1.0, %v922_v33  ;;  %v638_v45 = vmul.f32 %v632_v35, %v614_v41 }
 0x240   : > { %640 = vst [vmem:[%s356_s26 + $0x8] sm:$0xff] %v634_v34  ;;  %v635_v42 = vmul.f32 %v629_v37, %v611_v36 }
 0x241   : > { %v636_v44 = vmul.f32 %v630_v40, %v612_v39  ;;  %644 = vst [vmem:[%s356_s26 + $0x28] sm:$0xff] %v638_v45 }
 0x242   : > { %641 = vst [vmem:[%s356_s26 + $0x10] sm:$0xff] %v635_v42 }
 0x243   : > { %642 = vst [vmem:[%s356_s26 + $0x18] sm:$0xff] %v636_v44 }
 0x244 PF: > { %s15_s20 = sadd.s32 1, %s945_s20   ;;  %s1093_s18 = smov %s941_s19 }
 0x245   : > { %p12_p5 = scmp.ge.s32.totalorder %s15_s20, 4   ;;  %s1094_s19 = smov %s1096_s21 }
 0x247   :  { %14 = sbr.rel (!%p12_p5) target bundleno = 2 (0x2), region = 86 }

// kernel: vit_forward.19
= control target key start
LH: loop header
LB: loop body
LE: loop exit
PB: predicated region body
PF: predicated region fallthrough
CT: control target
= control target key end

     0   :  { %s823_s15 = smov 0   ;;  %s825_s16 = smov 0   ;;  %s922_s0 = inlined_call_operand.vmem [shape: f32[48,256], index: 0, kind: input, shape index: {}]   ;;  %s923_s1 = inlined_call_operand.vmem [shape: bf16[256,128], index: 1, kind: input, shape index: {}]   ;;  %s924_s2 = inlined_call_operand.vmem [shape: f32[1,128], index: 2, kind: input, shape index: {}]   ;;  %s925_s3 = inlined_call_operand.vmem [shape: f32[48,128], index: 3, kind: input, shape index: {}]   ;;  %s926_s4 = inlined_call_operand.vmem [shape: f32[48,128], index: 4, kind: output, shape index: {}]  }
   0x1   :  { %s827_s17 = smov 0  }
   0x2 LB: > { %s33_s18 = sadd.s32 1, %s792_s16  ;;  %p665_p0 = scmp.ge.s32.totalorder %s796_s17, 1  ;;  %s796_s17 = sphi %s827_s17, %s14_s17   ;;  %s792_s16 = sphi %s825_s16, %s928_s16   ;;  %s788_s15 = sphi %s823_s15, %s927_s15  }
   0x3   : > { %p35_p1 = scmp.ge.s32.totalorder %s33_s18, 2  ;;  %p232_p2 = scmp.lt.s32.totalorder %s796_s17, 3 }
   0x5   : > { %s930_s18 = smov (%p35_p1, %s33_s18), 0  ;;  %p233_p3 = pnand %p665_p0, %p232_p2 }
   0x6   : > { %v758_v0 = vld [vmem:[%s923_s1 + $0x40] sm:$0xff] (!%p233_p3)   ;;  %s285_s21 = smul.u32 (!%p233_p3), 3, %s788_s15  ;;  %v760_v2 = vld [vmem:[%s923_s1 + $0x48] sm:$0xff] (!%p233_p3)   ;;  %v762_v4 = vld [vmem:[%s923_s1 + $0x50] sm:$0xff] (!%p233_p3)  }
   0x7   : > { %236 = sbr.rel (%p233_p3) target bundleno = 261 (0x105), region = 36  ;;  %v759_v1 = vld [vmem:[%s923_s1] sm:$0xff] (!%p233_p3)   ;;  %690 = vmatprep.subr.bf16.mxu0 (!%p233_p3), %v758_v0  ;;  %718 = vmatprep.subr.bf16.mxu1 (!%p233_p3), %v758_v0  ;;  %v761_v3 = vld [vmem:[%s923_s1 + $0x8] sm:$0xff] (!%p233_p3)   ;;  %v763_v5 = vld [vmem:[%s923_s1 + $0x10] sm:$0xff] (!%p233_p3)  }
   0x8   : > { %p287_p4 = scmp.lt.s32.totalorder (!%p233_p3), %s285_s21, 5  ;;  %691 = vmatpush3.bf16.msra.mxu0 (!%p233_p3), %v759_v1  ;;  %726 = vmatpush3.bf16.msra.mxu1 (!%p233_p3), %v759_v1  ;;  %v764_v6 = vld [vmem:[%s923_s1 + $0x58] sm:$0xff] (!%p233_p3)   ;;  %v766_v8 = vld [vmem:[%s923_s1 + $0x60] sm:$0xff] (!%p233_p3)   ;;  %v768_v10 = vld [vmem:[%s923_s1 + $0x68] sm:$0xff] (!%p233_p3)  }
   0x9   : > { %692 = vmatprep.subr.bf16.mxu0 (!%p233_p3), %v760_v2  ;;  %719 = vmatprep.subr.bf16.mxu1 (!%p233_p3), %v760_v2  ;;  %v765_v7 = vld [vmem:[%s923_s1 + $0x18] sm:$0xff] (!%p233_p3)   ;;  %v767_v9 = vld [vmem:[%s923_s1 + $0x20] sm:$0xff] (!%p233_p3)   ;;  %v769_v16 = vld [vmem:[%s923_s1 + $0x28] sm:$0xff] (!%p233_p3)  }
   0xa   : > { %v770_v17 = vld [vmem:[%s923_s1 + $0x70] sm:$0xff] (!%p233_p3)   ;;  %v772_v19 = vld [vmem:[%s923_s1 + $0x78] sm:$0xff] (!%p233_p3)   ;;  %v670_v28 = vld [vmem:[%s924_s2] ss:$0 sm:$0xff] (!%p233_p3) }
   0xb   : > { %v771_v18 = vld [vmem:[%s923_s1 + $0x30] sm:$0xff] (!%p233_p3)   ;;  %v773_v20 = vld [vmem:[%s923_s1 + $0x38] sm:$0xff] (!%p233_p3)  }
   0xc   : > { %693 = vmatpush3.bf16.msra.mxu0 (!%p233_p3), %v761_v3  ;;  %727 = vmatpush3.bf16.msra.mxu1 (!%p233_p3), %v761_v3 }
   0xd   : > { %694 = vmatprep.subr.bf16.mxu0 (!%p233_p3), %v762_v4  ;;  %720 = vmatprep.subr.bf16.mxu1 (!%p233_p3), %v762_v4 }
   0xe   : > { %s932_s21 = smov (!%p287_p4, %s285_s21), 5 }
   0xf   : > { %s689_s8 = sshll.u32 %s932_s21, 4 }
  0x10   : > { %695 = vmatpush3.bf16.msra.mxu0 %v763_v5  ;;  %728 = vmatpush3.bf16.msra.mxu1 %v763_v5  ;;  %s874_s15 = scalar_lea.vmem %s922_s0, %s689_s8  ;;  %s668_s8 = sshll.u32 %s932_s21, 3 }
  0x11   : > { %696 = vmatprep.subr.bf16.mxu0 %v764_v6  ;;  %721 = vmatprep.subr.bf16.mxu1 %v764_v6  ;;  %v329_v11 = vld [vmem:[%s874_s15 + $0x8] sm:$0xff]  ;;  %v331_v12 = vld [vmem:[%s874_s15 + $0x18] sm:$0xff]  ;;  %v328_v21 = vld [vmem:[%s874_s15] sm:$0xff]  ;;  %s316_s11 = scalar_lea.vmem %s925_s3, %s668_s8 }
  0x12   : > { %v333_v13 = vld [vmem:[%s874_s15 + $0x28] sm:$0xff]  ;;  %v335_v14 = vpack.c.bf16 %v331_v12, %v329_v11  ;;  %v330_v22 = vld [vmem:[%s874_s15 + $0x10] sm:$0xff]  ;;  %v332_v23 = vld [vmem:[%s874_s15 + $0x20] sm:$0xff]  ;;  %s325_s15 = scalar_lea.vmem %s926_s4, %s668_s8 }
  0x13   : > { %v337_v15 = vpack.c.bf16 %v333_v13, %v333_v13  ;;  %v334_v24 = vpack.c.bf16 %v330_v22, %v328_v21  ;;  %v336_v25 = vpack.c.bf16 %v332_v23, %v332_v23  ;;  %v521_v35 = vld [vmem:[%s316_s11] sm:$0xff]  ;;  %v523_v40 = vld [vmem:[%s316_s11 + $0x10] sm:$0xff]  ;;  %v522_v42 = vld [vmem:[%s316_s11 + $0x8] sm:$0xff] }
  0x14   : > { %697 = vmatpush3.bf16.msra.mxu0 %v765_v7  ;;  %729 = vmatpush3.bf16.msra.mxu1 %v765_v7 }
  0x15   : > { %698 = vmatprep.subr.bf16.mxu0 %v766_v8  ;;  %722 = vmatprep.subr.bf16.mxu1 %v766_v8 }
  0x16   : > { %505 = vmatprep.mubr.bf16.mxu0 %v335_v14  ;;  %513 = vmatprep.mubr.bf16.mxu1 %v337_v15 }
  0x18   : > { %699 = vmatpush3.bf16.msra.mxu0 %v767_v9  ;;  %730 = vmatpush3.bf16.msra.mxu1 %v767_v9 }
  0x19   : > { %700 = vmatprep.subr.bf16.mxu0 %v768_v10  ;;  %723 = vmatprep.subr.bf16.mxu1 %v768_v10 }
  0x1c   : > { %701 = vmatpush3.bf16.msra.mxu0 %v769_v16  ;;  %731 = vmatpush3.bf16.msra.mxu1 %v769_v16 }
  0x1d   : > { %702 = vmatprep.subr.bf16.mxu0 %v770_v17  ;;  %724 = vmatprep.subr.bf16.mxu1 %v770_v17 }
  0x20   : > { %703 = vmatpush3.bf16.msra.mxu0 %v771_v18  ;;  %732 = vmatpush3.bf16.msra.mxu1 %v771_v18 }
  0x21   : > { %704 = vmatprep.subr.bf16.mxu0 %v772_v19  ;;  %725 = vmatprep.subr.bf16.mxu1 %v772_v19 }
  0x24   : > { %705 = vmatpush3.bf16.msra.mxu0 %v773_v20  ;;  %733 = vmatpush3.bf16.msra.mxu1 %v773_v20 }
  0x27   : > { %506 = vmatmul.mubr.bf16.vlgmr.msra.gmra.mrb[0].mxu0 %v334_v24  ;;  %514 = vmatmul.mubr.bf16.vlgmr.msra.gmra.mrb[0].mxu1 %v336_v25 }
  0xfa   : > { %v706_v26 = vpop.f32.mrb[0].mxu0  ;;  %v712_v27 = vpop.f32.mrb[0].mxu1 }
  0xfb   : > { %v707_v29 = vpop.f32.mrb[1].mxu0  ;;  %v713_v30 = vpop.f32.mrb[1].mxu1 }
  0xfc   : > { %v708_v31 = vadd.f32 %v707_v29, %v706_v26  ;;  %v714_v32 = vadd.f32 %v713_v30, %v712_v27  ;;  %v709_v33 = vpop.f32.mrb[2].mxu0  ;;  %v715_v34 = vpop.f32.mrb[2].mxu1 }
  0xfd   : > { %v710_v36 = vpop.f32.mrb[3].mxu0  ;;  %v716_v37 = vpop.f32.mrb[3].mxu1 }
  0xfe   : > { %v508_v38 = vadd.f32 %v708_v31, %v670_v28  ;;  %v516_v39 = vadd.f32 %v714_v32, %v670_v28  ;;  %v711_v41 = vadd.f32 %v710_v36, %v709_v33 }
 0x100   : > { %v524_v43 = vadd.f32 %v521_v35, %v508_v38  ;;  %v511_v44 = vadd.f32 %v711_v41, %v670_v28  ;;  %v526_v45 = vadd.f32 %v523_v40, %v516_v39 }
 0x102   : > { %527 = vst [vmem:[%s325_s15] sm:$0xff] %v524_v43  ;;  %v525_v46 = vadd.f32 %v522_v42, %v511_v44  ;;  %529 = vst [vmem:[%s325_s15 + $0x10] sm:$0xff] %v526_v45 }
 0x104   : > { %528 = vst [vmem:[%s325_s15 + $0x8] sm:$0xff] %v525_v46 }
 0x105 PF: > { %s14_s17 = sadd.s32 1, %s796_s17   ;;  %s927_s15 = smov %s792_s16 }
 0x106   : > { %p11_p5 = scmp.ge.s32.totalorder %s14_s17, 4   ;;  %s928_s16 = smov %s930_s18 }
 0x108   :  { %13 = sbr.rel (!%p11_p5) target bundleno = 2 (0x2), region = 75 }

// kernel: vit_forward.25
= control target key start
LH: loop header
LB: loop body
LE: loop exit
PB: predicated region body
PF: predicated region fallthrough
CT: control target
= control target key end

     0   :  { %vm27_vm0 = vcmask 1041408   ;;  %s345_s0 = inlined_call_operand.vmem [shape: f32[2,128], index: 0, kind: input, shape index: {}]   ;;  %s346_s1 = inlined_call_operand.vmem [shape: bf16[128,128], index: 1, kind: input, shape index: {}]   ;;  %s347_s2 = inlined_call_operand.vmem [shape: f32[1,128], index: 2, kind: input, shape index: {}]   ;;  %s348_s3 = inlined_call_operand.vmem [shape: f32[1,128], index: 3, kind: input, shape index: {}]   ;;  %s349_s4 = inlined_call_operand.vmem [shape: f32[1,128], index: 4, kind: input, shape index: {}]   ;;  %s350_s5 = inlined_call_operand.hbm [shape: f32[2,128], index: 5, kind: output, shape index: {}]  }
   0x1   :  { %v26_v0 = vld [vmem:[%s345_s0] sm:$0x3] }
   0x2   :  { %v28_v1 = vsel %vm27_vm0, %v26_v0, 0.0 }
   0x3   :  { %29 = vadd.xlane.f32.xlu0 %v28_v1 }
   0x4   :  { %10 = vsyncpa [#allocation4], 0  ;;  %v264_v2 = vmov 0.0   ;;  %v230_v8 = vld [vmem:[%s346_s1] sm:$0xff]   ;;  %v231_v9 = vld [vmem:[%s346_s1 + $0x8] sm:$0xff]   ;;  %vm265_vm1 = vmmov 0  }
   0x5   :  { %207 = vmatprep.subr.bf16.mxu0 %v264_v2  ;;  %v232_v10 = vld [vmem:[%s346_s1 + $0x10] sm:$0xff]   ;;  %v233_v11 = vld [vmem:[%s346_s1 + $0x18] sm:$0xff]   ;;  %v234_v12 = vld [vmem:[%s346_s1 + $0x20] sm:$0xff]   ;;  %223 = vmatprep.mubr.msk.bf16.mxu0 %vm265_vm1, %v264_v2  ;;  %s266_s15 = smov [#allocation3]  }
   0x6   :  { %208 = vmatpush3.bf16.msra.mxu0 %v230_v8  ;;  %v235_v13 = vld [vmem:[%s346_s1 + $0x28] sm:$0xff]   ;;  %v236_v14 = vld [vmem:[%s346_s1 + $0x30] sm:$0xff]   ;;  %v237_v15 = vld [vmem:[%s346_s1 + $0x38] sm:$0xff]   ;;  %s179_s16 = sshll.u32 %s266_s15, 4  ;;  %s180_s16 = int_to_ptr.vmem [resolvable:$true] %s179_s16 }
   0x7   :  { %209 = vmatprep.subr.bf16.mxu0 %v264_v2  ;;  %v187_v20 = vld [vmem:[%s348_s3] ss:$0 sm:$0xff]  ;;  %s240_s3 = scalar_lea.vmem %s180_s16, 32  ;;  %p245_p1 = scmp.lt.s32.totalorder %s180_s16, %s180_s16 }
   0x8   :  { %v188_v22 = vld [vmem:[%s349_s4] ss:$0 sm:$0xff]  ;;  %p241_p0 = scmp.ne.s32.totalorder %s180_s16, %s240_s3  ;;  %p246_p2 = scmp.lt.s32.totalorder %s240_s3, %s240_s3 }
   0x9   :  { %v189_v27 = vld [vmem:[%s347_s2] ss:$0 sm:$0xff] }
   0xa   :  { %210 = vmatpush3.bf16.msra.mxu0 %v231_v9  ;;  %p247_p3 = por %p246_p2, %p245_p1 }
   0xb   :  { %211 = vmatprep.subr.bf16.mxu0 %v264_v2 }
   0xc   :  { %p248_p4 = pnand %p247_p3, %p241_p0 }
   0xe   :  { %212 = vmatpush3.bf16.msra.mxu0 %v232_v10 }
   0xf   :  { %213 = vmatprep.subr.bf16.mxu0 %v264_v2 }
  0x12   :  { %214 = vmatpush3.bf16.msra.mxu0 %v233_v11 }
  0x13   :  { %215 = vmatprep.subr.bf16.mxu0 %v264_v2 }
  0x16   :  { %216 = vmatpush3.bf16.msra.mxu0 %v234_v12 }
  0x17   :  { %217 = vmatprep.subr.bf16.mxu0 %v264_v2 }
  0x1a   :  { %218 = vmatpush3.bf16.msra.mxu0 %v235_v13 }
  0x1b   :  { %219 = vmatprep.subr.bf16.mxu0 %v264_v2 }
  0x1e   :  { %220 = vmatpush3.bf16.msra.mxu0 %v236_v14 }
  0x1f   :  { %221 = vmatprep.subr.bf16.mxu0 %v264_v2 }
  0x22   :  { %222 = vmatpush3.bf16.msra.mxu0 %v237_v15 }
  0x90   :  { %v30_v3 = vpop.xlane.xlu0 %29 }
  0x91   :  { %v32_v4 = vmul.f32 0.0078125, %v30_v3 }
  0x93   :  { %v33_v5 = vsub.f32 %v26_v0, %v32_v4 }
  0x95   :  { %v34_v6 = vmul.f32 %v33_v5, %v33_v5 }
  0x97   :  { %v35_v7 = vsel %vm27_vm0, %v34_v6, 0.0 }
  0x98   :  { %36 = vadd.xlane.f32.xlu0 %v35_v7 }
 0x125   :  { %v37_v16 = vpop.xlane.xlu0 %36 }
 0x126   :  { %v38_v17 = vmul.f32 0.0078125, %v37_v16 }
 0x128   :  { %v39_v18 = vadd.f32 1e-05, %v38_v17 }
 0x12a   :  { %238 = vrsqrt.f32 %v39_v18 }
 0x134   :  { %v239_v19 = vpop.eup %238 }
 0x135   :  { %v41_v21 = vmul.f32 %v239_v19, %v33_v5 }
 0x137   :  { %v49_v23 = vmul.f32 %v187_v20, %v41_v21 }
 0x139   :  { %v57_v24 = vadd.f32 %v188_v22, %v49_v23 }
 0x13b   :  { %v58_v25 = vpack.c.bf16 %v57_v24, %v57_v24 }
 0x13d   :  { %59 = vst [vmem:[#allocation2] sm:$0x1] %v58_v25 }
 0x144   :  { %v60_v26 = vld [vmem:[#allocation2] sm:$0x1] }
 0x145   :  { %224 = vmatmul.mubr.bf16.vlgmr.msra.gmra.mrb[0].mxu0 %v60_v26 }
 0x218   :  { %v166_v28 = vpop.f32.mrb[0].mxu0 }
 0x219   :  { %v167_v29 = vadd.f32 %v189_v27, %v166_v28  ;;  %v225_v30 = vpop.f32.mrb[1].mxu0 }
 0x21a   :  { %v169_v31 = vpop.f32.mrb[2].mxu0 }
 0x21b   :  { %172 = vst [vmem:[#allocation3] sm:$0x3] %v167_v29  ;;  %v226_v32 = vpop.f32.mrb[3].mxu0 }
 0x21c   :  { %251 = shalt.err (!%p248_p4)
}
 0x21d   :  { %s252_s2 = scalar_lea.hbm %s350_s5, 32 }
 0x21e   :  { %p253_p5 = scmp.ne.s32.totalorder %s350_s5, %s252_s2  ;;  %p256_p6 = scmp.lt.u32.totalorder %s252_s2, %s350_s5 }
 0x220   :  { %p258_p7 = pnand %p256_p6, %p253_p5 }
 0x222   :  { %261 = shalt.err (!%p258_p7)
}
 0x223   :  { %182 = dma.vmem_to_hbm [thread:$0]  %s180_s16, 32, %s350_s5, [#allocation4]  }
 0x224   :  { %262 = dma.done.wait [#allocation4], 32  }
 0x225   :  { %263 = vsyncadd [#allocation4], 4294967264 }
 0x226   :  { %186 = vsyncpa [#allocation4], 1 }

</bundles_post_ra>
